<compile_context>
chip_gen: v7x
topology: tpu7x:2x2x1
jax: 0.10.0
libtpu: 0.0.40
codegen_flags: <defaults>
</compile_context>

<pallas_src>
import functools

import jax
import jax.numpy as jnp
from jax.experimental import pallas as pl
from jax.experimental.pallas import tpu as pltpu


# ---------------------------------------------------------------------------
# Padding helpers
# ---------------------------------------------------------------------------
def _round_up(v, m):
    return ((v + m - 1) // m) * m


def _pad2(a, rows, cols):
    a = jnp.asarray(a, jnp.float32)
    return jnp.pad(a, ((0, rows - a.shape[0]), (0, cols - a.shape[1])))


# ---------------------------------------------------------------------------
# Fused forward kernel: grid = (num_gnn_layers,)
# ---------------------------------------------------------------------------
def _fused_kernel(
    # resident inputs (block index constant across the layer grid -> DMA'd once)
    x_ref,        # (Np, Fp)   raw node features
    ea_ref,       # (Ep, EFp)  raw edge features
    src_ref,      # (Ep, 1)    int32 source node per edge (padded edges -> 0)
    dst_ref,      # (1, Ep)    int32 dest   node per edge (padded edges -> -1)
    batch_ref,    # (1, Np)    int32 graph id per node    (padded nodes -> -1)
    cmask_ref,    # (1, Hp)    1.0 on real hidden columns, 0.0 on padding
    emb_w_ref,    # (Fp, Hp)
    emb_b_ref,    # (1, Hp)
    r1w_ref,      # (Hp, HRp)
    r1b_ref,      # (1, HRp)
    r2w_ref,      # (HRp, Op)
    r2b_ref,      # (1, Op)
    # per-layer inputs (leading layer axis selected by index_map, squeezed)
    lew_ref,      # (EFp, Hp)  GENConv.lin_edge (bias=False)
    w1_ref,       # (Hp, H2p)  GENConv MLP layer 1 (bias=False)
    w2_ref,       # (H2p, Hp)  GENConv MLP layer 2 (bias=False)
    scale_ref,    # (1, 1)     MessageNorm learnable scale
    gamma_ref,    # (1, Hp)    BatchNorm weight
    beta_ref,     # (1, Hp)    BatchNorm bias
    mean_ref,     # (1, Hp)    BatchNorm running mean
    var_ref,      # (1, Hp)    BatchNorm running var
    # output
    o_ref,        # (Gp, Op)
    # scratch
    h_ref,        # (Np, Hp)   node features, resident in VMEM across layers
    *, n_pad, e_pad, g_pad,
):
    layer = pl.program_id(0)
    last = pl.num_programs(0) - 1

    # --- node embedding (once, first grid step) ---
    @pl.when(layer == 0)
    def _():
        h_ref[...] = (
            jnp.dot(x_ref[...], emb_w_ref[...], preferred_element_type=jnp.float32)
            + emb_b_ref[...])

    h = h_ref[...]

    # --- GENConv.lin_edge ---
    ea = jnp.dot(ea_ref[...], lew_ref[...], preferred_element_type=jnp.float32)

    # --- build selection matrices in-register from index vectors (no HBM one-hots) ---
    iota_en = jax.lax.broadcasted_iota(jnp.int32, (e_pad, n_pad), 1)
    src_sel = (src_ref[...] == iota_en).astype(jnp.float32)          # (Ep, Np)
    iota_ne = jax.lax.broadcasted_iota(jnp.int32, (n_pad, e_pad), 0)
    dst_sel = (dst_ref[...] == iota_ne).astype(jnp.float32)          # (Np, Ep)

    # --- message: relu(x[src] + edge_attr) + eps (eps masked off padded columns) ---
    x_j = jnp.dot(src_sel, h, preferred_element_type=jnp.float32)    # gather x[src]
    msg = (jnp.maximum(x_j + ea, 0.0) + 1e-7) * cmask_ref[...]

    # --- aggregate (aggr='add'): scatter-add onto destination nodes ---
    agg = jnp.dot(dst_sel, msg, preferred_element_type=jnp.float32)  # (Np, Hp)

    # --- MessageNorm (p=2): normalize(agg) * ||x||_2 * scale, folded per-row scalar ---
    ss = jnp.sum(agg * agg, axis=-1, keepdims=True)
    x_norm = jnp.sqrt(jnp.sum(h * h, axis=-1, keepdims=True))
    row_scale = x_norm * scale_ref[0, 0] * jax.lax.rsqrt(jnp.maximum(ss, 1e-24))
    out = agg * row_scale + h                                        # + residual

    # --- GENConv MLP (norm=None): Linear -> ReLU -> Linear, bias=False ---
    hid = jnp.maximum(
        jnp.dot(out, w1_ref[...], preferred_element_type=jnp.float32), 0.0)
    out = jnp.dot(hid, w2_ref[...], preferred_element_type=jnp.float32)

    # --- BatchNorm (eval, running stats) + LeakyReLU(0.01) ---
    inv = jax.lax.rsqrt(var_ref[...] + 1e-5)
    y = (out - mean_ref[...]) * inv * gamma_ref[...] + beta_ref[...]
    h_new = jnp.where(y > 0, y, 0.01 * y)
    h_ref[...] = h_new

    # --- last layer: global_add_pool + readout MLP, all on the resident features ---
    @pl.when(layer == last)
    def _():
        iota_gn = jax.lax.broadcasted_iota(jnp.int32, (g_pad, n_pad), 0)
        pool = (batch_ref[...] == iota_gn).astype(jnp.float32)       # (Gp, Np)
        hg = jnp.dot(pool, h_new, preferred_element_type=jnp.float32)
        r = jnp.dot(hg, r1w_ref[...], preferred_element_type=jnp.float32) + r1b_ref[...]
        r = jnp.where(r > 0, r, 0.01 * r)
        o = jnp.dot(r, r2w_ref[...], preferred_element_type=jnp.float32) + r2b_ref[...]
        o_ref[...] = o.astype(o_ref.dtype)


# ---------------------------------------------------------------------------
# Parameter initialization (deterministic, PyTorch-Linear-style uniform)
# ---------------------------------------------------------------------------
def _init_linear(key, fan_in, fan_out, bias=True):
    k1, k2 = jax.random.split(key)
    bound = 1.0 / float(fan_in) ** 0.5
    w = jax.random.uniform(k1, (fan_in, fan_out), jnp.float32, -bound, bound)
    if bias:
        b = jax.random.uniform(k2, (1, fan_out), jnp.float32, -bound, bound)
    else:
        b = jnp.zeros((1, fan_out), jnp.float32)
    return w, b


def init_params(key, num_node_features, edge_feature_dim, hidden_dim, output_dim,
                num_gnn_layers):
    keys = jax.random.split(key, 3 * num_gnn_layers + 3)
    params = {}
    params["node_emb_w"], params["node_emb_b"] = _init_linear(
        keys[0], num_node_features, hidden_dim, bias=True)

    layers = []
    for i in range(num_gnn_layers):
        kk = keys[1 + 3 * i: 1 + 3 * i + 3]
        le_w, _ = _init_linear(kk[0], edge_feature_dim, hidden_dim, bias=False)
        w1, _ = _init_linear(kk[1], hidden_dim, 2 * hidden_dim, bias=False)
        w2, _ = _init_linear(kk[2], 2 * hidden_dim, hidden_dim, bias=False)
        layers.append(dict(
            lin_edge_w=le_w,
            mlp_w1=w1, mlp_w2=w2,
            scale=jnp.ones((1, 1), jnp.float32),              # MessageNorm init
            bn_gamma=jnp.ones((1, hidden_dim), jnp.float32),  # BatchNorm defaults
            bn_beta=jnp.zeros((1, hidden_dim), jnp.float32),
            bn_mean=jnp.zeros((1, hidden_dim), jnp.float32),
            bn_var=jnp.ones((1, hidden_dim), jnp.float32),
        ))
    params["layers"] = layers

    params["readout1_w"], params["readout1_b"] = _init_linear(
        keys[-2], hidden_dim, hidden_dim // 2, bias=True)
    params["readout2_w"], params["readout2_b"] = _init_linear(
        keys[-1], hidden_dim // 2, output_dim, bias=True)
    return params


# ---------------------------------------------------------------------------
# Forward pass: pad, stack per-layer params, one fused pallas_call
# ---------------------------------------------------------------------------
def genconv_model_forward(params, x, edge_index, edge_attr, batch, num_graphs):
    if edge_attr.ndim == 1:
        edge_attr = edge_attr.reshape(-1, 1)

    n, f = x.shape
    e, ef = edge_attr.shape
    h = params["node_emb_w"].shape[1]
    h2 = params["layers"][0]["mlp_w1"].shape[1]
    hr = params["readout1_w"].shape[1]
    od = params["readout2_w"].shape[1]
    num_layers = len(params["layers"])

    # Lane-dense padding: feature dims -> multiples of 128; rows -> friendly tiles.
    n_pad = _round_up(max(n, 8), 128)
    e_pad = _round_up(max(e, 8), 128)
    g_pad = _round_up(max(num_graphs, 8), 8)
    f_pad, ef_pad = _round_up(f, 128), _round_up(ef, 128)
    h_pad, h2_pad = _round_up(h, 128), _round_up(h2, 128)
    hr_pad, o_pad = _round_up(hr, 128), _round_up(od, 128)

    layers = params["layers"]
    # Per-layer weights stacked along a leading layer axis (selected via index_map).
    le_w = jnp.stack([_pad2(l["lin_edge_w"], ef_pad, h_pad) for l in layers])
    w1 = jnp.stack([_pad2(l["mlp_w1"], h_pad, h2_pad) for l in layers])
    w2 = jnp.stack([_pad2(l["mlp_w2"], h2_pad, h_pad) for l in layers])
    scale = jnp.stack([l["scale"] for l in layers])                     # (L,1,1)
    gamma = jnp.stack([_pad2(l["bn_gamma"], 1, h_pad) for l in layers])
    beta = jnp.stack([_pad2(l["bn_beta"], 1, h_pad) for l in layers])
    mean = jnp.stack([_pad2(l["bn_mean"], 1, h_pad) for l in layers])
    var = jnp.stack([_pad2(l["bn_var"], 1, h_pad) for l in layers])

    # Padded, resident inputs.
    x_p = _pad2(x, n_pad, f_pad)
    ea_p = _pad2(edge_attr, e_pad, ef_pad)
    src = jnp.zeros((e_pad, 1), jnp.int32).at[:e, 0].set(edge_index[0].astype(jnp.int32))
    dst = jnp.full((1, e_pad), -1, jnp.int32).at[0, :e].set(edge_index[1].astype(jnp.int32))
    bat = jnp.full((1, n_pad), -1, jnp.int32).at[0, :n].set(batch.astype(jnp.int32))
    cmask = (jnp.arange(h_pad) < h).astype(jnp.float32).reshape(1, h_pad)
    emb_w = _pad2(params["node_emb_w"], f_pad, h_pad)
    emb_b = _pad2(params["node_emb_b"], 1, h_pad)
    r1w = _pad2(params["readout1_w"], h_pad, hr_pad)
    r1b = _pad2(params["readout1_b"], 1, hr_pad)
    r2w = _pad2(params["readout2_w"], hr_pad, o_pad)
    r2b = _pad2(params["readout2_b"], 1, o_pad)

    def const2(shape):
        return pl.BlockSpec(shape, lambda l: (0, 0))

    def per_layer(shape):
        return pl.BlockSpec((None,) + shape, lambda l: (l, 0, 0))

    in_specs = [
        const2((n_pad, f_pad)), const2((e_pad, ef_pad)),
        const2((e_pad, 1)), const2((1, e_pad)), const2((1, n_pad)),
        const2((1, h_pad)),
        const2((f_pad, h_pad)), const2((1, h_pad)),
        const2((h_pad, hr_pad)), const2((1, hr_pad)),
        const2((hr_pad, o_pad)), const2((1, o_pad)),
        per_layer((ef_pad, h_pad)), per_layer((h_pad, h2_pad)),
        per_layer((h2_pad, h_pad)), per_layer((1, 1)),
        per_layer((1, h_pad)), per_layer((1, h_pad)),
        per_layer((1, h_pad)), per_layer((1, h_pad)),
    ]

    grid_spec = pltpu.PrefetchScalarGridSpec(
        num_scalar_prefetch=0,
        grid=(num_layers,),
        in_specs=in_specs,
        out_specs=pl.BlockSpec((g_pad, o_pad), lambda l: (0, 0)),
        scratch_shapes=[pltpu.VMEM((n_pad, h_pad), jnp.float32)],
    )

    out = pl.pallas_call(
        functools.partial(_fused_kernel, n_pad=n_pad, e_pad=e_pad, g_pad=g_pad),
        out_shape=jax.ShapeDtypeStruct((g_pad, o_pad), jnp.float32),
        grid_spec=grid_spec,
        compiler_params=pltpu.CompilerParams(
            dimension_semantics=("arbitrary",)),  # layers carry h sequentially
    )(x_p, ea_p, src, dst, bat, cmask, emb_w, emb_b, r1w, r1b, r2w, r2b,
      le_w, w1, w2, scale, gamma, beta, mean, var)

    return out[:num_graphs, :od]


# ---------------------------------------------------------------------------
if __name__ == "__main__":
    num_node_features = 6
    edge_feature_dim = 4
    hidden_dim = 32
    output_dim = 3
    num_gnn_layers = 3

    N, E, G = 16, 40, 2

    key = jax.random.PRNGKey(0)
    kx, ke, ks, kd, kp = jax.random.split(key, 5)

    x = jax.random.normal(kx, (N, num_node_features), jnp.float32)
    edge_attr = jax.random.normal(ke, (E, edge_feature_dim), jnp.float32)
    src = jax.random.randint(ks, (E,), 0, N)
    dst = jax.random.randint(kd, (E,), 0, N)
    edge_index = jnp.stack([src, dst])                       # (2, E)
    batch = jnp.concatenate([jnp.zeros(N // 2, jnp.int32),
                             jnp.ones(N - N // 2, jnp.int32)])

    params = init_params(kp, num_node_features, edge_feature_dim, hidden_dim,
                         output_dim, num_gnn_layers)

    out = genconv_model_forward(params, x, edge_index, edge_attr, batch, G)
    jax.block_until_ready(out)
    assert out.shape == (G, output_dim)
    print("KERNEL_OK")
</pallas_src>

<mosaic_0001>
module attributes {stable_mosaic.version = 11 : i64} {
  func.func @_fused_kernel(%arg0: i32, %arg1: memref<128x128xf32, #tpu.memory_space<vmem>>, %arg2: memref<128x128xf32, #tpu.memory_space<vmem>>, %arg3: memref<128x1xi32, #tpu.memory_space<vmem>>, %arg4: memref<1x128xi32, #tpu.memory_space<vmem>>, %arg5: memref<1x128xi32, #tpu.memory_space<vmem>>, %arg6: memref<1x128xf32, #tpu.memory_space<vmem>>, %arg7: memref<128x128xf32, #tpu.memory_space<vmem>>, %arg8: memref<1x128xf32, #tpu.memory_space<vmem>>, %arg9: memref<128x128xf32, #tpu.memory_space<vmem>>, %arg10: memref<1x128xf32, #tpu.memory_space<vmem>>, %arg11: memref<128x128xf32, #tpu.memory_space<vmem>>, %arg12: memref<1x128xf32, #tpu.memory_space<vmem>>, %arg13: memref<1x128x128xf32, #tpu.memory_space<vmem>>, %arg14: memref<1x128x128xf32, #tpu.memory_space<vmem>>, %arg15: memref<1x128x128xf32, #tpu.memory_space<vmem>>, %arg16: memref<1x1x1xf32, #tpu.memory_space<vmem>>, %arg17: memref<1x1x128xf32, #tpu.memory_space<vmem>>, %arg18: memref<1x1x128xf32, #tpu.memory_space<vmem>>, %arg19: memref<1x1x128xf32, #tpu.memory_space<vmem>>, %arg20: memref<1x1x128xf32, #tpu.memory_space<vmem>>, %arg21: memref<8x128xf32, #tpu.memory_space<vmem>>, %arg22: memref<128x128xf32, #tpu.memory_space<vmem>>) attributes {dimension_semantics = [#tpu.dimension_semantics<arbitrary>], iteration_bounds = array<i64: 3>, scalar_prefetch = 0 : i64, scratch_operands = 1 : i64, tpu.core_type = #tpu.core_type<tc>, window_params = [{pipeline_mode = #tpu.pipeline_mode<synchronous>, transform_indices = @transform_0, window_bounds = array<i64: 128, 128>}, {pipeline_mode = #tpu.pipeline_mode<synchronous>, transform_indices = @transform_1, window_bounds = array<i64: 128, 128>}, {pipeline_mode = #tpu.pipeline_mode<synchronous>, transform_indices = @transform_2, window_bounds = array<i64: 128, 1>}, {pipeline_mode = #tpu.pipeline_mode<synchronous>, transform_indices = @transform_3, window_bounds = array<i64: 1, 128>}, {pipeline_mode = #tpu.pipeline_mode<synchronous>, transform_indices = @transform_4, window_bounds = array<i64: 1, 128>}, {pipeline_mode = #tpu.pipeline_mode<synchronous>, transform_indices = @transform_5, window_bounds = array<i64: 1, 128>}, {pipeline_mode = #tpu.pipeline_mode<synchronous>, transform_indices = @transform_6, window_bounds = array<i64: 128, 128>}, {pipeline_mode = #tpu.pipeline_mode<synchronous>, transform_indices = @transform_7, window_bounds = array<i64: 1, 128>}, {pipeline_mode = #tpu.pipeline_mode<synchronous>, transform_indices = @transform_8, window_bounds = array<i64: 128, 128>}, {pipeline_mode = #tpu.pipeline_mode<synchronous>, transform_indices = @transform_9, window_bounds = array<i64: 1, 128>}, {pipeline_mode = #tpu.pipeline_mode<synchronous>, transform_indices = @transform_10, window_bounds = array<i64: 128, 128>}, {pipeline_mode = #tpu.pipeline_mode<synchronous>, transform_indices = @transform_11, window_bounds = array<i64: 1, 128>}, {transform_indices = @transform_12, window_bounds = array<i64: 1, 128, 128>}, {transform_indices = @transform_13, window_bounds = array<i64: 1, 128, 128>}, {transform_indices = @transform_14, window_bounds = array<i64: 1, 128, 128>}, {transform_indices = @transform_15, window_bounds = array<i64: 1, 1, 1>}, {transform_indices = @transform_16, window_bounds = array<i64: 1, 1, 128>}, {transform_indices = @transform_17, window_bounds = array<i64: 1, 1, 128>}, {transform_indices = @transform_18, window_bounds = array<i64: 1, 1, 128>}, {transform_indices = @transform_19, window_bounds = array<i64: 1, 1, 128>}, {pipeline_mode = #tpu.pipeline_mode<synchronous>, transform_indices = @transform_20, window_bounds = array<i64: 8, 128>}]} {
    %c0_i32 = arith.constant 0 : i32
    %0 = arith.cmpi eq, %arg0, %c0_i32 : i32
    %1 = arith.extui %0 : i1 to i32
    %c0_i32_0 = arith.constant 0 : i32
    %2 = arith.cmpi ne, %1, %c0_i32_0 : i32
    scf.if %2 {
      %c0_50 = arith.constant 0 : index
      %c0_51 = arith.constant 0 : index
      %84 = vector.load %arg1[%c0_50, %c0_51] : memref<128x128xf32, #tpu.memory_space<vmem>>, vector<128x128xf32>
      %c0_52 = arith.constant 0 : index
      %c0_53 = arith.constant 0 : index
      %85 = vector.load %arg7[%c0_52, %c0_53] : memref<128x128xf32, #tpu.memory_space<vmem>>, vector<128x128xf32>
      %cst_54 = arith.constant dense<0.000000e+00> : vector<128x128xf32>
      %86 = tpu.matmul %84, %85, %cst_54 {dimension_numbers = #tpu.dot_dimension_numbers<[1], [0], [0], [1], [0, 0, 1, 1], [], []>} : vector<128x128xf32>, vector<128x128xf32>, vector<128x128xf32> -> vector<128x128xf32>
      %c0_55 = arith.constant 0 : index
      %c0_56 = arith.constant 0 : index
      %87 = vector.load %arg8[%c0_55, %c0_56] : memref<1x128xf32, #tpu.memory_space<vmem>>, vector<1x128xf32>
      %88 = vector.broadcast %87 : vector<1x128xf32> to vector<128x128xf32>
      %89 = arith.addf %86, %88 : vector<128x128xf32>
      %c0_57 = arith.constant 0 : index
      %c0_58 = arith.constant 0 : index
      %90 = vector.load %arg22[%c0_57, %c0_58] : memref<128x128xf32, #tpu.memory_space<vmem>>, vector<128x128xf32>
      tpu.vector_store %arg22[%c0_57, %c0_58], %89 {strides = array<i32>} : memref<128x128xf32, #tpu.memory_space<vmem>>, vector<128x128xf32>,
    } else {
    }
    %c0 = arith.constant 0 : index
    %c0_1 = arith.constant 0 : index
    %3 = vector.load %arg22[%c0, %c0_1] : memref<128x128xf32, #tpu.memory_space<vmem>>, vector<128x128xf32>
    %c0_2 = arith.constant 0 : index
    %c0_3 = arith.constant 0 : index
    %4 = vector.load %arg2[%c0_2, %c0_3] : memref<128x128xf32, #tpu.memory_space<vmem>>, vector<128x128xf32>
    %c0_4 = arith.constant 0 : index
    %c0_5 = arith.constant 0 : index
    %c0_6 = arith.constant 0 : index
    %5 = vector.load %arg13[%c0_4, %c0_5, %c0_6] : memref<1x128x128xf32, #tpu.memory_space<vmem>>, vector<1x128x128xf32>
    %6 = vector.shape_cast %5 : vector<1x128x128xf32> to vector<128x128xf32>
    %cst = arith.constant dense<0.000000e+00> : vector<128x128xf32>
    %7 = tpu.matmul %4, %6, %cst {dimension_numbers = #tpu.dot_dimension_numbers<[1], [0], [0], [1], [0, 0, 1, 1], [], []>} : vector<128x128xf32>, vector<128x128xf32>, vector<128x128xf32> -> vector<128x128xf32>
    %8 = tpu.iota {dimensions = array<i32: 1>} : vector<128x128xi32>
    %c0_7 = arith.constant 0 : index
    %c0_8 = arith.constant 0 : index
    %9 = vector.load %arg3[%c0_7, %c0_8] : memref<128x1xi32, #tpu.memory_space<vmem>>, vector<128x1xi32>
    %10 = vector.broadcast %9 : vector<128x1xi32> to vector<128x128xi32>
    %11 = arith.cmpi eq, %10, %8 : vector<128x128xi32>
    %12 = arith.extui %11 : vector<128x128xi1> to vector<128x128xi32>
    %13 = arith.sitofp %12 : vector<128x128xi32> to vector<128x128xf32>
    %14 = tpu.iota {dimensions = array<i32: 0>} : vector<128x128xi32>
    %c0_9 = arith.constant 0 : index
    %c0_10 = arith.constant 0 : index
    %15 = vector.load %arg4[%c0_9, %c0_10] : memref<1x128xi32, #tpu.memory_space<vmem>>, vector<1x128xi32>
    %16 = vector.broadcast %15 : vector<1x128xi32> to vector<128x128xi32>
    %17 = arith.cmpi eq, %16, %14 : vector<128x128xi32>
    %18 = arith.extui %17 : vector<128x128xi1> to vector<128x128xi32>
    %19 = arith.sitofp %18 : vector<128x128xi32> to vector<128x128xf32>
    %cst_11 = arith.constant dense<0.000000e+00> : vector<128x128xf32>
    %20 = tpu.matmul %13, %3, %cst_11 {dimension_numbers = #tpu.dot_dimension_numbers<[1], [0], [0], [1], [0, 0, 1, 1], [], []>} : vector<128x128xf32>, vector<128x128xf32>, vector<128x128xf32> -> vector<128x128xf32>
    %21 = arith.addf %20, %7 : vector<128x128xf32>
    %cst_12 = arith.constant 0.000000e+00 : f32
    %22 = vector.broadcast %cst_12 : f32 to vector<128x128xf32>
    %23 = arith.maximumf %21, %22 : vector<128x128xf32>
    %cst_13 = arith.constant 1.000000e-07 : f32
    %24 = vector.broadcast %cst_13 : f32 to vector<128x128xf32>
    %25 = arith.addf %23, %24 : vector<128x128xf32>
    %c0_14 = arith.constant 0 : index
    %c0_15 = arith.constant 0 : index
    %26 = vector.load %arg6[%c0_14, %c0_15] : memref<1x128xf32, #tpu.memory_space<vmem>>, vector<1x128xf32>
    %27 = vector.broadcast %26 : vector<1x128xf32> to vector<128x128xf32>
    %28 = arith.mulf %25, %27 : vector<128x128xf32>
    %cst_16 = arith.constant dense<0.000000e+00> : vector<128x128xf32>
    %29 = tpu.matmul %19, %28, %cst_16 {dimension_numbers = #tpu.dot_dimension_numbers<[1], [0], [0], [1], [0, 0, 1, 1], [], []>} : vector<128x128xf32>, vector<128x128xf32>, vector<128x128xf32> -> vector<128x128xf32>
    %30 = arith.mulf %29, %29 : vector<128x128xf32>
    %cst_17 = arith.constant dense<0.000000e+00> : vector<128xf32>
    %31 = vector.multi_reduction <add>, %30, %cst_17 [1] : vector<128x128xf32> to vector<128xf32>
    %32 = vector.shape_cast %31 : vector<128xf32> to vector<128x1xf32>
    %33 = arith.mulf %3, %3 : vector<128x128xf32>
    %cst_18 = arith.constant dense<0.000000e+00> : vector<128xf32>
    %34 = vector.multi_reduction <add>, %33, %cst_18 [1] : vector<128x128xf32> to vector<128xf32>
    %35 = vector.shape_cast %34 : vector<128xf32> to vector<128x1xf32>
    %36 = math.sqrt %35 : vector<128x1xf32>
    %c0_19 = arith.constant 0 : index
    %c0_20 = arith.constant 0 : index
    %c0_21 = arith.constant 0 : index
    %37 = vector.load %arg16[%c0_19, %c0_20, %c0_21] : memref<1x1x1xf32, #tpu.memory_space<vmem>>, vector<1x1x1xf32>
    %38 = vector.extract %37[0, 0, 0] : f32 from vector<1x1x1xf32>
    %39 = vector.broadcast %38 : f32 to vector<128x1xf32>
    %40 = arith.mulf %36, %39 : vector<128x1xf32>
    %cst_22 = arith.constant 1.000000e-24 : f32
    %41 = vector.broadcast %cst_22 : f32 to vector<128x1xf32>
    %42 = arith.maximumf %32, %41 : vector<128x1xf32>
    %43 = math.rsqrt %42 : vector<128x1xf32>
    %44 = arith.mulf %40, %43 : vector<128x1xf32>
    %45 = vector.broadcast %44 : vector<128x1xf32> to vector<128x128xf32>
    %46 = arith.mulf %29, %45 : vector<128x128xf32>
    %47 = arith.addf %46, %3 : vector<128x128xf32>
    %c0_23 = arith.constant 0 : index
    %c0_24 = arith.constant 0 : index
    %c0_25 = arith.constant 0 : index
    %48 = vector.load %arg14[%c0_23, %c0_24, %c0_25] : memref<1x128x128xf32, #tpu.memory_space<vmem>>, vector<1x128x128xf32>
    %49 = vector.shape_cast %48 : vector<1x128x128xf32> to vector<128x128xf32>
    %cst_26 = arith.constant dense<0.000000e+00> : vector<128x128xf32>
    %50 = tpu.matmul %47, %49, %cst_26 {dimension_numbers = #tpu.dot_dimension_numbers<[1], [0], [0], [1], [0, 0, 1, 1], [], []>} : vector<128x128xf32>, vector<128x128xf32>, vector<128x128xf32> -> vector<128x128xf32>
    %cst_27 = arith.constant 0.000000e+00 : f32
    %51 = vector.broadcast %cst_27 : f32 to vector<128x128xf32>
    %52 = arith.maximumf %50, %51 : vector<128x128xf32>
    %c0_28 = arith.constant 0 : index
    %c0_29 = arith.constant 0 : index
    %c0_30 = arith.constant 0 : index
    %53 = vector.load %arg15[%c0_28, %c0_29, %c0_30] : memref<1x128x128xf32, #tpu.memory_space<vmem>>, vector<1x128x128xf32>
    %54 = vector.shape_cast %53 : vector<1x128x128xf32> to vector<128x128xf32>
    %cst_31 = arith.constant dense<0.000000e+00> : vector<128x128xf32>
    %55 = tpu.matmul %52, %54, %cst_31 {dimension_numbers = #tpu.dot_dimension_numbers<[1], [0], [0], [1], [0, 0, 1, 1], [], []>} : vector<128x128xf32>, vector<128x128xf32>, vector<128x128xf32> -> vector<128x128xf32>
    %c0_32 = arith.constant 0 : index
    %c0_33 = arith.constant 0 : index
    %c0_34 = arith.constant 0 : index
    %56 = vector.load %arg20[%c0_32, %c0_33, %c0_34] : memref<1x1x128xf32, #tpu.memory_space<vmem>>, vector<1x1x128xf32>
    %57 = vector.shape_cast %56 : vector<1x1x128xf32> to vector<1x128xf32>
    %cst_35 = arith.constant 9.99999974E-6 : f32
    %58 = vector.broadcast %cst_35 : f32 to vector<1x128xf32>
    %59 = arith.addf %57, %58 : vector<1x128xf32>
    %60 = math.rsqrt %59 : vector<1x128xf32>
    %c0_36 = arith.constant 0 : index
    %c0_37 = arith.constant 0 : index
    %c0_38 = arith.constant 0 : index
    %61 = vector.load %arg19[%c0_36, %c0_37, %c0_38] : memref<1x1x128xf32, #tpu.memory_space<vmem>>, vector<1x1x128xf32>
    %62 = vector.shape_cast %61 : vector<1x1x128xf32> to vector<1x128xf32>
    %63 = vector.broadcast %62 : vector<1x128xf32> to vector<128x128xf32>
    %64 = arith.subf %55, %63 : vector<128x128xf32>
    %65 = vector.broadcast %60 : vector<1x128xf32> to vector<128x128xf32>
    %66 = arith.mulf %64, %65 : vector<128x128xf32>
    %c0_39 = arith.constant 0 : index
    %c0_40 = arith.constant 0 : index
    %c0_41 = arith.constant 0 : index
    %67 = vector.load %arg17[%c0_39, %c0_40, %c0_41] : memref<1x1x128xf32, #tpu.memory_space<vmem>>, vector<1x1x128xf32>
    %68 = vector.shape_cast %67 : vector<1x1x128xf32> to vector<1x128xf32>
    %69 = vector.broadcast %68 : vector<1x128xf32> to vector<128x128xf32>
    %70 = arith.mulf %66, %69 : vector<128x128xf32>
    %c0_42 = arith.constant 0 : index
    %c0_43 = arith.constant 0 : index
    %c0_44 = arith.constant 0 : index
    %71 = vector.load %arg18[%c0_42, %c0_43, %c0_44] : memref<1x1x128xf32, #tpu.memory_space<vmem>>, vector<1x1x128xf32>
    %72 = vector.shape_cast %71 : vector<1x1x128xf32> to vector<1x128xf32>
    %73 = vector.broadcast %72 : vector<1x128xf32> to vector<128x128xf32>
    %74 = arith.addf %70, %73 : vector<128x128xf32>
    %cst_45 = arith.constant 0.000000e+00 : f32
    %75 = vector.broadcast %cst_45 : f32 to vector<128x128xf32>
    %76 = arith.cmpf ogt, %74, %75 : vector<128x128xf32>
    %cst_46 = arith.constant 0.00999999977 : f32
    %77 = vector.broadcast %cst_46 : f32 to vector<128x128xf32>
    %78 = arith.mulf %77, %74 : vector<128x128xf32>
    %79 = arith.select %76, %74, %78 : vector<128x128xi1>, vector<128x128xf32>
    %c0_47 = arith.constant 0 : index
    %c0_48 = arith.constant 0 : index
    %80 = vector.load %arg22[%c0_47, %c0_48] : memref<128x128xf32, #tpu.memory_space<vmem>>, vector<128x128xf32>
    tpu.vector_store %arg22[%c0_47, %c0_48], %79 {strides = array<i32>} : memref<128x128xf32, #tpu.memory_space<vmem>>, vector<128x128xf32>,
    %c2_i32 = arith.constant 2 : i32
    %81 = arith.cmpi eq, %arg0, %c2_i32 : i32
    %82 = arith.extui %81 : i1 to i32
    %c0_i32_49 = arith.constant 0 : i32
    %83 = arith.cmpi ne, %82, %c0_i32_49 : i32
    scf.if %83 {
      %84 = tpu.iota {dimensions = array<i32: 0>} : vector<8x128xi32>
      %c0_50 = arith.constant 0 : index
      %c0_51 = arith.constant 0 : index
      %85 = vector.load %arg5[%c0_50, %c0_51] : memref<1x128xi32, #tpu.memory_space<vmem>>, vector<1x128xi32>
      %86 = vector.broadcast %85 : vector<1x128xi32> to vector<8x128xi32>
      %87 = arith.cmpi eq, %86, %84 : vector<8x128xi32>
      %88 = arith.extui %87 : vector<8x128xi1> to vector<8x128xi32>
      %89 = arith.sitofp %88 : vector<8x128xi32> to vector<8x128xf32>
      %cst_52 = arith.constant dense<0.000000e+00> : vector<8x128xf32>
      %90 = tpu.matmul %89, %79, %cst_52 {dimension_numbers = #tpu.dot_dimension_numbers<[1], [0], [0], [1], [0, 0, 1, 1], [], []>} : vector<8x128xf32>, vector<128x128xf32>, vector<8x128xf32> -> vector<8x128xf32>
      %c0_53 = arith.constant 0 : index
      %c0_54 = arith.constant 0 : index
      %91 = vector.load %arg9[%c0_53, %c0_54] : memref<128x128xf32, #tpu.memory_space<vmem>>, vector<128x128xf32>
      %cst_55 = arith.constant dense<0.000000e+00> : vector<8x128xf32>
      %92 = tpu.matmul %90, %91, %cst_55 {dimension_numbers = #tpu.dot_dimension_numbers<[1], [0], [0], [1], [0, 0, 1, 1], [], []>} : vector<8x128xf32>, vector<128x128xf32>, vector<8x128xf32> -> vector<8x128xf32>
      %c0_56 = arith.constant 0 : index
      %c0_57 = arith.constant 0 : index
      %93 = vector.load %arg10[%c0_56, %c0_57] : memref<1x128xf32, #tpu.memory_space<vmem>>, vector<1x128xf32>
      %94 = vector.broadcast %93 : vector<1x128xf32> to vector<8x128xf32>
      %95 = arith.addf %92, %94 : vector<8x128xf32>
      %cst_58 = arith.constant 0.000000e+00 : f32
      %96 = vector.broadcast %cst_58 : f32 to vector<8x128xf32>
      %97 = arith.cmpf ogt, %95, %96 : vector<8x128xf32>
      %cst_59 = arith.constant 0.00999999977 : f32
      %98 = vector.broadcast %cst_59 : f32 to vector<8x128xf32>
      %99 = arith.mulf %98, %95 : vector<8x128xf32>
      %100 = arith.select %97, %95, %99 : vector<8x128xi1>, vector<8x128xf32>
      %c0_60 = arith.constant 0 : index
      %c0_61 = arith.constant 0 : index
      %101 = vector.load %arg11[%c0_60, %c0_61] : memref<128x128xf32, #tpu.memory_space<vmem>>, vector<128x128xf32>
      %cst_62 = arith.constant dense<0.000000e+00> : vector<8x128xf32>
      %102 = tpu.matmul %100, %101, %cst_62 {dimension_numbers = #tpu.dot_dimension_numbers<[1], [0], [0], [1], [0, 0, 1, 1], [], []>} : vector<8x128xf32>, vector<128x128xf32>, vector<8x128xf32> -> vector<8x128xf32>
      %c0_63 = arith.constant 0 : index
      %c0_64 = arith.constant 0 : index
      %103 = vector.load %arg12[%c0_63, %c0_64] : memref<1x128xf32, #tpu.memory_space<vmem>>, vector<1x128xf32>
      %104 = vector.broadcast %103 : vector<1x128xf32> to vector<8x128xf32>
      %105 = arith.addf %102, %104 : vector<8x128xf32>
      %c0_65 = arith.constant 0 : index
      %c0_66 = arith.constant 0 : index
      %106 = vector.load %arg21[%c0_65, %c0_66] : memref<8x128xf32, #tpu.memory_space<vmem>>, vector<8x128xf32>
      tpu.vector_store %arg21[%c0_65, %c0_66], %105 {strides = array<i32>} : memref<8x128xf32, #tpu.memory_space<vmem>>, vector<8x128xf32>,
    } else {
    }
    return
  }
  func.func @transform_0(%arg0: i32) -> (i32, i32) {
    %c0_i32 = arith.constant 0 : i32
    %c0_i32_0 = arith.constant 0 : i32
    %c0_i32_1 = arith.constant 0 : i32
    return %c0_i32, %c0_i32_0 : i32, i32
  }
  func.func @transform_1(%arg0: i32) -> (i32, i32) {
    %c0_i32 = arith.constant 0 : i32
    %c0_i32_0 = arith.constant 0 : i32
    %c0_i32_1 = arith.constant 0 : i32
    return %c0_i32, %c0_i32_0 : i32, i32
  }
  func.func @transform_2(%arg0: i32) -> (i32, i32) {
    %c0_i32 = arith.constant 0 : i32
    %c0_i32_0 = arith.constant 0 : i32
    %c0_i32_1 = arith.constant 0 : i32
    return %c0_i32, %c0_i32_0 : i32, i32
  }
  func.func @transform_3(%arg0: i32) -> (i32, i32) {
    %c0_i32 = arith.constant 0 : i32
    %c0_i32_0 = arith.constant 0 : i32
    %c0_i32_1 = arith.constant 0 : i32
    return %c0_i32, %c0_i32_0 : i32, i32
  }
  func.func @transform_4(%arg0: i32) -> (i32, i32) {
    %c0_i32 = arith.constant 0 : i32
    %c0_i32_0 = arith.constant 0 : i32
    %c0_i32_1 = arith.constant 0 : i32
    return %c0_i32, %c0_i32_0 : i32, i32
  }
  func.func @transform_5(%arg0: i32) -> (i32, i32) {
    %c0_i32 = arith.constant 0 : i32
    %c0_i32_0 = arith.constant 0 : i32
    %c0_i32_1 = arith.constant 0 : i32
    return %c0_i32, %c0_i32_0 : i32, i32
  }
  func.func @transform_6(%arg0: i32) -> (i32, i32) {
    %c0_i32 = arith.constant 0 : i32
    %c0_i32_0 = arith.constant 0 : i32
    %c0_i32_1 = arith.constant 0 : i32
    return %c0_i32, %c0_i32_0 : i32, i32
  }
  func.func @transform_7(%arg0: i32) -> (i32, i32) {
    %c0_i32 = arith.constant 0 : i32
    %c0_i32_0 = arith.constant 0 : i32
    %c0_i32_1 = arith.constant 0 : i32
    return %c0_i32, %c0_i32_0 : i32, i32
  }
  func.func @transform_8(%arg0: i32) -> (i32, i32) {
    %c0_i32 = arith.constant 0 : i32
    %c0_i32_0 = arith.constant 0 : i32
    %c0_i32_1 = arith.constant 0 : i32
    return %c0_i32, %c0_i32_0 : i32, i32
  }
  func.func @transform_9(%arg0: i32) -> (i32, i32) {
    %c0_i32 = arith.constant 0 : i32
    %c0_i32_0 = arith.constant 0 : i32
    %c0_i32_1 = arith.constant 0 : i32
    return %c0_i32, %c0_i32_0 : i32, i32
  }
  func.func @transform_10(%arg0: i32) -> (i32, i32) {
    %c0_i32 = arith.constant 0 : i32
    %c0_i32_0 = arith.constant 0 : i32
    %c0_i32_1 = arith.constant 0 : i32
    return %c0_i32, %c0_i32_0 : i32, i32
  }
  func.func @transform_11(%arg0: i32) -> (i32, i32) {
    %c0_i32 = arith.constant 0 : i32
    %c0_i32_0 = arith.constant 0 : i32
    %c0_i32_1 = arith.constant 0 : i32
    return %c0_i32, %c0_i32_0 : i32, i32
  }
  func.func @transform_12(%arg0: i32) -> (i32, i32, i32) {
    %c0_i32 = arith.constant 0 : i32
    %c0_i32_0 = arith.constant 0 : i32
    %c0_i32_1 = arith.constant 0 : i32
    return %arg0, %c0_i32, %c0_i32_0 : i32, i32, i32
  }
  func.func @transform_13(%arg0: i32) -> (i32, i32, i32) {
    %c0_i32 = arith.constant 0 : i32
    %c0_i32_0 = arith.constant 0 : i32
    %c0_i32_1 = arith.constant 0 : i32
    return %arg0, %c0_i32, %c0_i32_0 : i32, i32, i32
  }
  func.func @transform_14(%arg0: i32) -> (i32, i32, i32) {
    %c0_i32 = arith.constant 0 : i32
    %c0_i32_0 = arith.constant 0 : i32
    %c0_i32_1 = arith.constant 0 : i32
    return %arg0, %c0_i32, %c0_i32_0 : i32, i32, i32
  }
  func.func @transform_15(%arg0: i32) -> (i32, i32, i32) {
    %c0_i32 = arith.constant 0 : i32
    %c0_i32_0 = arith.constant 0 : i32
    %c0_i32_1 = arith.constant 0 : i32
    return %arg0, %c0_i32, %c0_i32_0 : i32, i32, i32
  }
  func.func @transform_16(%arg0: i32) -> (i32, i32, i32) {
    %c0_i32 = arith.constant 0 : i32
    %c0_i32_0 = arith.constant 0 : i32
    %c0_i32_1 = arith.constant 0 : i32
    return %arg0, %c0_i32, %c0_i32_0 : i32, i32, i32
  }
  func.func @transform_17(%arg0: i32) -> (i32, i32, i32) {
    %c0_i32 = arith.constant 0 : i32
    %c0_i32_0 = arith.constant 0 : i32
    %c0_i32_1 = arith.constant 0 : i32
    return %arg0, %c0_i32, %c0_i32_0 : i32, i32, i32
  }
  func.func @transform_18(%arg0: i32) -> (i32, i32, i32) {
    %c0_i32 = arith.constant 0 : i32
    %c0_i32_0 = arith.constant 0 : i32
    %c0_i32_1 = arith.constant 0 : i32
    return %arg0, %c0_i32, %c0_i32_0 : i32, i32, i32
  }
  func.func @transform_19(%arg0: i32) -> (i32, i32, i32) {
    %c0_i32 = arith.constant 0 : i32
    %c0_i32_0 = arith.constant 0 : i32
    %c0_i32_1 = arith.constant 0 : i32
    return %arg0, %c0_i32, %c0_i32_0 : i32, i32, i32
  }
  func.func @transform_20(%arg0: i32) -> (i32, i32) {
    %c0_i32 = arith.constant 0 : i32
    %c0_i32_0 = arith.constant 0 : i32
    %c0_i32_1 = arith.constant 0 : i32
    return %c0_i32, %c0_i32_0 : i32, i32
  }
}

</mosaic_0001>

<bundles_post_ra>
// kernel: tpu_custom_call.1
= control target key start
LH: loop header
LB: loop body
LE: loop exit
PB: predicated region body
PF: predicated region fallthrough
CT: control target
= control target key end

     0   :  { %s5887_s0 = inlined_call_operand.vmem [shape: f32[128,128], index: 0, kind: input, shape index: {}]   ;;  %s5888_s1 = inlined_call_operand.hbm [shape: f32[128,128], index: 1, kind: input, shape index: {}]   ;;  %s5889_s2 = inlined_call_operand.vmem [shape: s32[128,1], index: 2, kind: input, shape index: {}]   ;;  %s5890_s3 = inlined_call_operand.vmem [shape: s32[1,128], index: 3, kind: input, shape index: {}]   ;;  %s5891_s4 = inlined_call_operand.vmem [shape: s32[1,128], index: 4, kind: input, shape index: {}]   ;;  %s5892_s5 = inlined_call_operand.vmem [shape: f32[1,128], index: 5, kind: input, shape index: {}]   ;;  %s5893_s6 = inlined_call_operand.hbm [shape: f32[128,128], index: 6, kind: input, shape index: {}]   ;;  %s5894_s7 = inlined_call_operand.vmem [shape: f32[1,128], index: 7, kind: input, shape index: {}]   ;;  %s5895_s8 = inlined_call_operand.hbm [shape: f32[128,128], index: 8, kind: input, shape index: {}]   ;;  %s5896_s9 = inlined_call_operand.vmem [shape: f32[1,128], index: 9, kind: input, shape index: {}]   ;;  %s5897_s10 = inlined_call_operand.hbm [shape: f32[128,128], index: 10, kind: input, shape index: {}]   ;;  %s5898_s11 = inlined_call_operand.vmem [shape: f32[1,128], index: 11, kind: input, shape index: {}]   ;;  %s5899_s12 = inlined_call_operand.hbm [shape: f32[3,128,128], index: 12, kind: input, shape index: {}]   ;;  %s5900_s13 = inlined_call_operand.hbm [shape: f32[3,128,128], index: 13, kind: input, shape index: {}]   ;;  %s5901_s14 = inlined_call_operand.hbm [shape: f32[3,128,128], index: 14, kind: input, shape index: {}]   ;;  %s5902_s15 = inlined_call_operand.vmem [shape: f32[3,1,1], index: 15, kind: input, shape index: {}]   ;;  %s5903_s16 = inlined_call_operand.vmem [shape: f32[3,1,128], index: 16, kind: input, shape index: {}]   ;;  %s5904_s17 = inlined_call_operand.vmem [shape: f32[3,1,128], index: 17, kind: input, shape index: {}]   ;;  %s5905_s18 = inlined_call_operand.vmem [shape: f32[3,1,128], index: 18, kind: input, shape index: {}]   ;;  %s5906_s19 = inlined_call_operand.vmem [shape: f32[3,1,128], index: 19, kind: input, shape index: {}]   ;;  %s5907_s20 = inlined_call_operand.hbm [shape: f32[8,128], index: 20, kind: output, shape index: {}]  }
   0x1   :  { %5931 = sst [smem:[#allocation23_spill]] %s5887_s0 }
   0x2   :  { %5932 = sst [smem:[#allocation24_spill]] %s5888_s1 }
   0x3   :  { %5933 = sst [smem:[#allocation25_spill]] %s5889_s2 }
   0x4   :  { %5934 = sst [smem:[#allocation26_spill]] %s5890_s3 }
   0x5   :  { %5935 = sst [smem:[#allocation27_spill]] %s5891_s4 }
   0x6   :  { %5936 = sst [smem:[#allocation28_spill]] %s5892_s5 }
   0x7   :  { %5937 = sst [smem:[#allocation29_spill]] %s5893_s6 }
   0x8   :  { %5938 = sst [smem:[#allocation30_spill]] %s5894_s7 }
   0x9   :  { %5939 = sst [smem:[#allocation31_spill]] %s5896_s9 }
   0xa   :  { %5940 = sst [smem:[#allocation32_spill]] %s5898_s11 }
   0xb   :  { %5941 = sst [smem:[#allocation33_spill]] %s5899_s12 }
   0xc   :  { %5942 = sst [smem:[#allocation34_spill]] %s5900_s13 }
   0xd   :  { %5943 = sst [smem:[#allocation35_spill]] %s5904_s17 }
   0xe   :  { %5944 = sst [smem:[#allocation36_spill]] %s5905_s18 }
   0xf   :  { %5945 = sst [smem:[#allocation37_spill]] %s5906_s19 }
  0x10   :  { %5946 = sst [smem:[#allocation38_spill]] %s5907_s20 }
  0x11   :  { %25 = vsyncpa [#allocation4], 0 }
  0x12   :  { %26 = vsyncpa [#allocation7], 0 }
  0x13   :  { %27 = vsyncpa [#allocation10], 0 }
  0x14   :  { %28 = vsyncpa [#allocation5], 0  ;;  %s4712_s1 = smov 0   ;;  %s4714_s22 = smov 0  }
  0x15   :  { %s4716_s23 = smov 0   ;;  %s4718_s24 = smov 0  }
  0x16 LB: > { %5947 = sst [smem:[#allocation20_spill]] %s4585_s23  ;;  %s4731_s2 = sadd.s32 4294967295, %s4589_s24   ;;  %s4589_s24 = sphi %s4718_s24, %s5993_s24   ;;  %s4585_s23 = sphi %s4716_s23, %s5995_s23   ;;  %s4581_s22 = sphi %s4714_s22, %s5997_s22   ;;  %s4577_s1 = sphi %s4712_s1, %s5996_s1  }
  0x17   : > { %p306_p0 = scmp.ne.s32.totalorder %s4581_s22, %s4577_s1  ;;  %p5912_p1 = scmp.eq.s32.totalorder %s4731_s2, 0 }
  0x18   : > { %p3018_p2 = scmp.ge.s32.totalorder %s4589_s24, 1  ;;  %p520_p3 = scmp.lt.s32.totalorder %s4589_s24, 4 }
  0x19   : > { %p4740_p5 = por %p5912_p1, %p306_p0  ;;  %s4591_s26 = smov [#allocation3]  }
  0x1a   : > { %p4744_p6 = pnand %p3018_p2, %p520_p3  ;;  %s535_s27 = sshll.u32 %s4591_s26, 4  ;;  %s536_s27 = int_to_ptr.vmem [resolvable:$true] %s535_s27 }
  0x1b   : > { %s5948_s25 = scalar_select %p4740_p5, 1, 0 }
  0x1c   : > { %s5949_s3 = scalar_select %p4744_p6, 1, 0 }
  0x1d   : > { %p4149_p7 = pneg %p4744_p6  ;;  %s4757_s4 = sadd.s32 1, %s4589_s24  }
  0x1e   : > { %5951 = sst [smem:[#allocation21_spill]] %s4757_s4  ;;  %s293_s29 = sadd.s32 1, %s4585_s23 }
  0x1f   : > { %p4752_p8 = pnand %p4149_p7, %p5912_p1  ;;  %s290_s30 = ssub.s32 %s4589_s24, %s4757_s4 }
  0x20   : > { %s5952_s1 = sld [smem:[#allocation24_spill]] }
  0x21   : > { %s5950_s28 = scalar_select %p4752_p8, 1, 0 }
  0x22   : > { %p4770_p10 = pneg %p4752_p8 }
  0x24   : > { %s5954_s5 = scalar_select %p4770_p10, 1, 0 }
  0x26   : > { %s5953_s20 = smov %s5952_s1  ;;  %s4311_s11 = scalar_lea.hbm %s5952_s1, 2048 }
  0x27   : > { %p4312_p9 = scmp.ne.s32.totalorder %s5953_s20, %s4311_s11  ;;  %p4318_p13 = scmp.lt.u32.totalorder %s4311_s11, %s5953_s20 }
  0x29   : > { %p4314_p11 = pnand %p4770_p10, %p4312_p9 }
  0x2b   : > { %p4315_p12 = pneg %p4314_p11 }
  0x2d   : > { %p4320_p0 = pnand %p4318_p13, %p4315_p12 }
  0x2f   : > { %4323 = shalt.err (!%p4320_p0)
}
  0x30   : > { %s4324_s0 = scalar_lea.vmem %s536_s27, 2048  ;;  %p4332_p4 = scmp.lt.s32.totalorder %s536_s27, %s536_s27 }
  0x31   : > { %p4325_p2 = scmp.ne.s32.totalorder %s536_s27, %s4324_s0  ;;  %p4333_p1 = scmp.lt.s32.totalorder %s4324_s0, %s4324_s0 }
  0x33   : > { %p4327_p3 = pnand %p4325_p2, %p4770_p10  ;;  %p4334_p5 = por %p4333_p1, %p4332_p4 }
  0x35   : > { %p4328_p7 = pneg %p4327_p3 }
  0x37   : > { %p4335_p6 = pnand %p4334_p5, %p4328_p7 }
  0x39   : > { %4338 = shalt.err (!%p4335_p6)
}
  0x3a   : > { %s5917_s9 = smov 128   ;;  %s5919_s7 = smov 8  }
  0x3b   : > { %4152 = dma.hbm_to_vmem [thread:$0]  (!%p4752_p8), %s5953_s20, 2048, %s536_s27, [#allocation4], %s5917_s9, %s5917_s9, %s5919_s7  }
  0x3c   : > { %p291_p1 = scmp.eq.s32.totalorder %s290_s30, 0  ;;  %p300_p4 = scmp.ne.s32.totalorder %s4585_s23, %s4581_s22 }
  0x3d   : > { %p301_p5 = scmp.eq.s32.totalorder %s4589_s24, 0  ;;  %p4176_p6 = scmp.lt.s32.totalorder %s4589_s24, 3 }
  0x3e   : > { %s4794_s21 = scalar_select %p291_p1, %s4585_s23, %s293_s29  }
  0x3f   : > { %p302_p9 = por %p301_p5, %p300_p4  ;;  %s609_s1 = sand.u32 1, %s4589_s24  }
  0x40   : > { %5955 = sst [smem:[#allocation22_spill]] %s4794_s21  ;;  %s611_s26 = sand.u32 1, %s4585_s23  }
  0x41   : > { %s4798_s0 = sshll.u32 %s611_s26, 7  ;;  %s4801_s4 = sshll.u32 %s4589_s24, 11 }
  0x42   : > { %s5956_s12 = sld [smem:[#allocation33_spill]]  ;;  %s613_s27 = scalar_lea.vmem [#allocation11], %s4798_s0 }
  0x43   : > { %s620_s29 = sshll.u32 %s613_s27, 4  ;;  %p4810_p11 = pnand %p4176_p6, %p302_p9  ;;  %s4814_s29 = int_to_ptr.vmem [resolvable:$true] %s620_s29 }
  0x44   : > { %s4594_s24 = smov [#allocation6]   ;;  %s4818_s26 = scalar_lea.sflag [#allocation4], %s609_s1 }
  0x45   : > { %s5957_s30 = scalar_select %p4810_p11, 1, 0 }
  0x46   : > { %s4816_s19 = sshll.u32 %s4594_s24, 4  ;;  %p4824_p13 = pneg %p4810_p11  ;;  %s561_s19 = int_to_ptr.vmem [resolvable:$true] %s4816_s19 }
  0x48   : > { %s4807_s11 = scalar_lea.hbm %s5956_s12, %s4801_s4  ;;  %s4344_s7 = scalar_lea.hbm %s5956_s12, 6144 }
  0x49   : > { %s4339_s17 = scalar_lea.hbm %s4807_s11, 2048  ;;  %p4345_p3 = scmp.lt.u32.totalorder %s4807_s11, %s5956_s12 }
  0x4a   : > { %p4340_p12 = scmp.ne.s32.totalorder %s4807_s11, %s4339_s17  ;;  %p4346_p7 = scmp.lt.u32.totalorder %s4344_s7, %s4339_s17 }
  0x4b   : > { %s5958_s18 = scalar_select %p4824_p13, 1, 0 }
  0x4c   : > { %p4342_p0 = pnand %p4824_p13, %p4340_p12  ;;  %p4347_p1 = por %p4346_p7, %p4345_p3 }
  0x4d   : > { %p4348_p4 = scmp.lt.u32.totalorder %s4339_s17, %s4807_s11 }
  0x4e   : > { %p4343_p2 = pneg %p4342_p0 }
  0x4f   : > { %p4349_p5 = por %p4348_p4, %p4347_p1 }
  0x51   : > { %p4350_p6 = pnand %p4349_p5, %p4343_p2 }
  0x53   : > { %4353 = shalt.err (!%p4350_p6)
}
  0x54   : > { %s4354_s1 = scalar_lea.vmem %s4814_s29, 2048  ;;  %s4595_s9 = smov [#allocation11]  }
  0x55   : > { %p4355_p9 = scmp.ne.s32.totalorder %s4814_s29, %s4354_s1  ;;  %s4359_s27 = sshll.u32 %s4595_s9, 4  ;;  %s4360_s27 = int_to_ptr.vmem [resolvable:$false] %s4359_s27 }
  0x56   : > { %s4361_s20 = scalar_lea.vmem %s4360_s27, 4096  ;;  %p4362_p8 = scmp.lt.s32.totalorder %s4814_s29, %s4360_s27 }
  0x57   : > { %p4357_p12 = pnand %p4355_p9, %p4824_p13  ;;  %p4363_p10 = scmp.lt.s32.totalorder %s4361_s20, %s4354_s1 }
  0x59   : > { %p4358_p0 = pneg %p4357_p12  ;;  %p4364_p3 = por %p4363_p10, %p4362_p8 }
  0x5b   : > { %p4365_p7 = pnand %p4364_p3, %p4358_p0 }
  0x5d   : > { %4368 = shalt.err (!%p4365_p7)
}
  0x5e   : > { %s5959_s7 = smov 8   ;;  %s5960_s17 = smov 128  }
  0x5f   : > { %4165 = dma.hbm_to_vmem [thread:$0]  (!%p4810_p11), %s4807_s11, 2048, %s4814_s29, %s4818_s26, %s5960_s17, %s5960_s17, %s5959_s7  }
  0x60   : > { %s5961_s6 = sld [smem:[#allocation29_spill]]  ;;  %p5962_p10 = scmp.ne.s32.totalorder %s5954_s5, 0 }
  0x66   : > { %s4369_s27 = scalar_lea.hbm %s5961_s6, 2048 }
  0x67   : > { %p4370_p8 = scmp.ne.s32.totalorder %s5961_s6, %s4369_s27  ;;  %p4376_p4 = scmp.lt.u32.totalorder %s4369_s27, %s5961_s6 }
  0x69   : > { %p4372_p2 = pnand %p4370_p8, %p5962_p10 }
  0x6b   : > { %p4373_p1 = pneg %p4372_p2 }
  0x6d   : > { %p4378_p5 = pnand %p4376_p4, %p4373_p1 }
  0x6f   : > { %4381 = shalt.err (!%p4378_p5)
}
  0x70   : > { %s4382_s23 = scalar_lea.vmem %s561_s19, 2048  ;;  %p4390_p0 = scmp.lt.s32.totalorder %s561_s19, %s561_s19 }
  0x71   : > { %p4383_p6 = scmp.ne.s32.totalorder %s561_s19, %s4382_s23  ;;  %p4391_p3 = scmp.lt.s32.totalorder %s4382_s23, %s4382_s23 }
  0x73   : > { %p4385_p9 = pnand %p4383_p6, %p5962_p10  ;;  %p4392_p7 = por %p4391_p3, %p4390_p0 }
  0x75   : > { %p4386_p12 = pneg %p4385_p9 }
  0x77   : > { %p4393_p11 = pnand %p4392_p7, %p4386_p12 }
  0x79   : > { %4396 = shalt.err (!%p4393_p11)
}
  0x7a   : > { %p5963_p8 = scmp.ne.s32.totalorder %s5950_s28, 0  ;;  %s5964_s13 = sld [smem:[#allocation34_spill]] }
  0x7b   : > { %s634_s23 = scalar_lea.vmem [#allocation12], %s4798_s0 }
  0x7c   : > { %4155 = dma.hbm_to_vmem [thread:$0]  (!%p5963_p8), %s5961_s6, 2048, %s561_s19, [#allocation7], %s5960_s17, %s5960_s17, %s5959_s7  }
  0x7d   : > { %s641_s9 = sshll.u32 %s634_s23, 4  ;;  %s4880_s9 = int_to_ptr.vmem [resolvable:$true] %s641_s9 }
  0x80   : > { %s4877_s24 = scalar_lea.hbm %s5964_s13, %s4801_s4  ;;  %s4402_s20 = scalar_lea.hbm %s5964_s13, 6144 }
  0x81   : > { %s4397_s27 = scalar_lea.hbm %s4877_s24, 2048  ;;  %p4403_p4 = scmp.lt.u32.totalorder %s4877_s24, %s5964_s13 }
  0x82   : > { %p4398_p11 = scmp.ne.s32.totalorder %s4877_s24, %s4397_s27  ;;  %p4404_p5 = scmp.lt.u32.totalorder %s4402_s20, %s4397_s27 }
  0x83   : > { %p4406_p9 = scmp.lt.u32.totalorder %s4397_s27, %s4877_s24 }
  0x84   : > { %p4400_p2 = pnand %p4398_p11, %p4824_p13  ;;  %p4405_p6 = por %p4404_p5, %p4403_p4 }
  0x86   : > { %p4401_p1 = pneg %p4400_p2  ;;  %p4407_p12 = por %p4406_p9, %p4405_p6 }
  0x88   : > { %p4408_p0 = pnand %p4407_p12, %p4401_p1 }
  0x8a   : > { %4411 = shalt.err (!%p4408_p0)
}
  0x8b   : > { %s4412_s11 = scalar_lea.vmem %s4880_s9, 2048  ;;  %s4596_s29 = smov [#allocation12]  }
  0x8c   : > { %p4413_p3 = scmp.ne.s32.totalorder %s4880_s9, %s4412_s11  ;;  %s4417_s23 = sshll.u32 %s4596_s29, 4  ;;  %s4418_s23 = int_to_ptr.vmem [resolvable:$false] %s4417_s23 }
  0x8d   : > { %s4419_s1 = scalar_lea.vmem %s4418_s23, 4096  ;;  %p4420_p2 = scmp.lt.s32.totalorder %s4880_s9, %s4418_s23 }
  0x8e   : > { %p4415_p7 = pnand %p4413_p3, %p4824_p13  ;;  %p4421_p8 = scmp.lt.s32.totalorder %s4419_s1, %s4412_s11 }
  0x90   : > { %p4416_p11 = pneg %p4415_p7  ;;  %p4422_p4 = por %p4421_p8, %p4420_p2 }
  0x92   : > { %p4423_p5 = pnand %p4422_p4, %p4416_p11 }
  0x94   : > { %4426 = shalt.err (!%p4423_p5)
}
  0x95   : > { %p5965_p1 = scmp.ne.s32.totalorder %s5957_s30, 0  ;;  %s4597_s27 = smov [#allocation8]  }
  0x96   : > { %s576_s19 = sshll.u32 %s4597_s27, 4  ;;  %s4598_s20 = smov [#allocation9]   ;;  %s577_s19 = int_to_ptr.vmem [resolvable:$true] %s576_s19 }
  0x97   : > { %4168 = dma.hbm_to_vmem [thread:$0]  (!%p5965_p1), %s4877_s24, 2048, %s4880_s9, %s4818_s26, %s5960_s17, %s5960_s17, %s5959_s7  }
  0x98   : > { %s592_s12 = sshll.u32 %s4598_s20, 4  ;;  %s4427_s29 = scalar_lea.hbm %s5895_s8, 2048  ;;  %s593_s12 = int_to_ptr.vmem [resolvable:$true] %s592_s12 }
  0x99   : > { %p4428_p8 = scmp.ne.s32.totalorder %s5895_s8, %s4427_s29  ;;  %p4434_p12 = scmp.lt.u32.totalorder %s4427_s29, %s5895_s8 }
  0x9b   : > { %p4430_p6 = pnand %p4428_p8, %p5962_p10 }
  0x9d   : > { %p4431_p9 = pneg %p4430_p6 }
  0x9f   : > { %p4436_p0 = pnand %p4434_p12, %p4431_p9 }
  0xa1   : > { %4439 = shalt.err (!%p4436_p0)
}
  0xa2   : > { %s4440_s24 = scalar_lea.vmem %s577_s19, 2048  ;;  %p4448_p2 = scmp.lt.s32.totalorder %s577_s19, %s577_s19 }
  0xa3   : > { %p4441_p3 = scmp.ne.s32.totalorder %s577_s19, %s4440_s24  ;;  %p4449_p4 = scmp.lt.s32.totalorder %s4440_s24, %s4440_s24 }
  0xa5   : > { %p4443_p7 = pnand %p4441_p3, %p5962_p10  ;;  %p4450_p5 = por %p4449_p4, %p4448_p2 }
  0xa7   : > { %p4444_p11 = pneg %p4443_p7 }
  0xa9   : > { %p4451_p1 = pnand %p4450_p5, %p4444_p11 }
  0xab   : > { %4454 = shalt.err (!%p4451_p1)
}
  0xac   : > { %p5966_p8 = scmp.ne.s32.totalorder %s5950_s28, 0  ;;  %s4455_s20 = scalar_lea.hbm %s5897_s10, 2048 }
  0xad   : > { %p4456_p6 = scmp.ne.s32.totalorder %s5897_s10, %s4455_s20  ;;  %p4462_p12 = scmp.lt.u32.totalorder %s4455_s20, %s5897_s10 }
  0xae   : > { %4158 = dma.hbm_to_vmem [thread:$0]  (!%p5966_p8), %s5895_s8, 2048, %s577_s19, [#allocation7], %s5960_s17, %s5960_s17, %s5959_s7  }
  0xaf   : > { %p4458_p1 = pnand %p4456_p6, %p5962_p10 }
  0xb1   : > { %p4459_p9 = pneg %p4458_p1 }
  0xb3   : > { %p4464_p0 = pnand %p4462_p12, %p4459_p9 }
  0xb5   : > { %4467 = shalt.err (!%p4464_p0)
}
  0xb6   : > { %s4468_s1 = scalar_lea.vmem %s593_s12, 2048  ;;  %p4476_p2 = scmp.lt.s32.totalorder %s593_s12, %s593_s12 }
  0xb7   : > { %p4469_p3 = scmp.ne.s32.totalorder %s593_s12, %s4468_s1  ;;  %p4477_p4 = scmp.lt.s32.totalorder %s4468_s1, %s4468_s1 }
  0xb9   : > { %p4471_p7 = pnand %p4469_p3, %p5962_p10  ;;  %p4478_p5 = por %p4477_p4, %p4476_p2 }
  0xbb   : > { %p4472_p11 = pneg %p4471_p7 }
  0xbd   : > { %p4479_p13 = pnand %p4478_p5, %p4472_p11 }
  0xbf   : > { %4482 = shalt.err (!%p4479_p13)
}
  0xc0   : > { %4161 = dma.hbm_to_vmem [thread:$0]  (!%p5966_p8), %s5897_s10, 2048, %s593_s12, [#allocation10], %s5960_s17, %s5960_s17, %s5959_s7  }
  0xc1   : > { %s4953_s13 = scalar_lea.hbm %s5901_s14, %s4801_s4  ;;  %s655_s28 = scalar_lea.vmem [#allocation13], %s4798_s0 }
  0xc2   : > { %s662_s9 = sshll.u32 %s655_s28, 4  ;;  %s4483_s27 = scalar_lea.hbm %s4953_s13, 2048  ;;  %s4956_s9 = int_to_ptr.vmem [resolvable:$true] %s662_s9 }
  0xc3   : > { %p4484_p13 = scmp.ne.s32.totalorder %s4953_s13, %s4483_s27  ;;  %p5967_p10 = scmp.ne.s32.totalorder %s5958_s18, 0 }
  0xc4   : > { %s4488_s21 = scalar_lea.hbm %s5901_s14, 6144  ;;  %p4489_p8 = scmp.lt.u32.totalorder %s4953_s13, %s5901_s14 }
  0xc5   : > { %p4486_p6 = pnand %p4484_p13, %p5967_p10  ;;  %p4490_p9 = scmp.lt.u32.totalorder %s4488_s21, %s4483_s27 }
  0xc6   : > { %p4492_p0 = scmp.lt.u32.totalorder %s4483_s27, %s4953_s13 }
  0xc7   : > { %p4487_p1 = pneg %p4486_p6  ;;  %p4491_p12 = por %p4490_p9, %p4489_p8 }
  0xc9   : > { %p4493_p3 = por %p4492_p0, %p4491_p12 }
  0xcb   : > { %p4494_p7 = pnand %p4493_p3, %p4487_p1 }
  0xcd   : > { %4497 = shalt.err (!%p4494_p7)
}
  0xce   : > { %s4498_s0 = scalar_lea.vmem %s4956_s9, 2048  ;;  %s4599_s29 = smov [#allocation13]  }
  0xcf   : > { %p4499_p11 = scmp.ne.s32.totalorder %s4956_s9, %s4498_s0  ;;  %s4503_s23 = sshll.u32 %s4599_s29, 4  ;;  %s4504_s23 = int_to_ptr.vmem [resolvable:$false] %s4503_s23 }
  0xd0   : > { %s4505_s1 = scalar_lea.vmem %s4504_s23, 4096  ;;  %p4506_p5 = scmp.lt.s32.totalorder %s4956_s9, %s4504_s23 }
  0xd1   : > { %p4501_p2 = pnand %p4499_p11, %p5967_p10  ;;  %p4507_p13 = scmp.lt.s32.totalorder %s4505_s1, %s4498_s0 }
  0xd3   : > { %p4502_p4 = pneg %p4501_p2  ;;  %p4508_p6 = por %p4507_p13, %p4506_p5 }
  0xd5   : > { %p4509_p8 = pnand %p4508_p6, %p4502_p4 }
  0xd7   : > { %4512 = shalt.err (!%p4509_p8)
}
  0xd8   : > { %p5968_p1 = scmp.ne.s32.totalorder %s5957_s30, 0  ;;  %p5969_p10 = scmp.ne.s32.totalorder %s5949_s3, 0 }
  0xd9   : > { %p5970_p9 = scmp.eq.s32.totalorder (!%p5969_p10), %s4731_s2, 0 }
  0xda   : > { %4171 = dma.hbm_to_vmem [thread:$0]  (!%p5968_p1), %s4953_s13, 2048, %s4956_s9, %s4818_s26, %s5960_s17, %s5960_s17, %s5959_s7  }
  0xdb   : > { %704 = sbr.rel (%p5969_p10) target bundleno = 2472 (0x9a8), region = 100 }
  0xe2   : > { %4556 = dma.done.wait (%p5970_p9), [#allocation4], 2048   ;;  %p5971_p12 = pmov %p5970_p9 }
  0xe3   : > { %p5972_p0 = pmov %p5970_p9 }
  0xe4   : > { %4558 = vsyncadd (%p5971_p12), [#allocation4], 4294965248 }
  0xe5   : > { %4560 = dma.done.wait (%p5972_p0), [#allocation7], 4096   ;;  %p5973_p3 = pmov %p5972_p0 }
  0xe6   : > { %p5974_p7 = pmov %p5972_p0 }
  0xe7   : > { %4562 = vsyncadd (%p5973_p3), [#allocation7], 4294963200 }
  0xe8   : > { %4564 = dma.done.wait (%p5974_p7), [#allocation10], 2048   ;;  %p5975_p11 = pmov %p5972_p0 }
  0xe9   : > { %s722_s3 = sand.u32 1, %s4731_s2   ;;  %s724_s30 = sand.u32 1, %s4581_s22  }
  0xea   : > { %4566 = vsyncadd (%p5975_p11), [#allocation10], 4294965248  ;;  %s3038_s26 = sshll.u32 %s724_s30, 7  ;;  %s723_s18 = scalar_lea.sflag [#allocation4], %s722_s3 }
  0xeb   : > { %s4999_s7 = scalar_lea.vmem [#allocation11], %s3038_s26  ;;  %p5976_p2 = scmp.ne.s32.totalorder %s5948_s25, 0 }
  0xed   : > { %4568 = dma.done.wait (%p5976_p2), %s723_s18, 6144  }
  0xee   : > { %4570 = vsyncadd (%p5976_p2), %s723_s18, 4294961152  ;;  %p821_p4 = scmp.lt.s32.totalorder %s4731_s2, 2  ;;  %s5977_s27 = sld [smem:[#allocation35_spill]] }
  0xef   : > { %s5978_s11 = sld [smem:[#allocation36_spill]]  ;;  %s5979_s23 = sld [smem:[#allocation37_spill]] }
  0xf0   : > { %s5007_s17 = scalar_select %p821_p4, %s4731_s2, 2 }
  0xf1   : > { %s5029_s3 = scalar_lea.vmem [#allocation12], %s3038_s26  ;;  %s5031_s30 = scalar_lea.vmem [#allocation13], %s3038_s26 }
  0xf2   : > { %s823_s5 = scalar_lea.vmem %s5902_s15, %s5007_s17  ;;  %s826_s28 = scalar_lea.vmem %s5903_s16, %s5007_s17 }
  0xf3   : > { %p5980_p5 = scmp.ne.s32.totalorder %s4731_s2, 0 }
  0xf4   : > { %s829_s20 = scalar_lea.vmem %s5977_s27, %s5007_s17  ;;  %v856_v0 = vld [vmem:[#allocation6] sm:$0xff] (!%p5980_p5)  ;;  %v857_v1 = vld [vmem:[#allocation6 + $0x8] sm:$0xff] (!%p5980_p5)  ;;  %v858_v2 = vld [vmem:[#allocation6 + $0x10] sm:$0xff] (!%p5980_p5)  ;;  %s5981_s19 = sld [smem:[#allocation23_spill]] (!%p5980_p5) }
  0xf5   : > { %s832_s4 = scalar_lea.vmem %s5978_s11, %s5007_s17  ;;  %s835_s1 = scalar_lea.vmem %s5979_s23, %s5007_s17  ;;  %v3809_v3 = vpack.c.bf16 (!%p5980_p5), %v857_v1, %v856_v0  ;;  %v859_v4 = vld [vmem:[#allocation6 + $0x18] sm:$0xff] (!%p5980_p5)  ;;  %v860_v6 = vld [vmem:[#allocation6 + $0x20] sm:$0xff] (!%p5980_p5)  ;;  %v861_v7 = vld [vmem:[#allocation6 + $0x28] sm:$0xff] (!%p5980_p5) }
  0xf6   : > { %839 = sbr.rel (%p5980_p5) target bundleno = 508 (0x1fc), region = 132  ;;  %v3813_v5 = vpack.c.bf16 (!%p5980_p5), %v859_v4, %v858_v2  ;;  %v3817_v8 = vpack.c.bf16 (!%p5980_p5), %v861_v7, %v860_v6  ;;  %v862_v11 = vld [vmem:[#allocation6 + $0x30] sm:$0xff] (!%p5980_p5)  ;;  %v863_v12 = vld [vmem:[#allocation6 + $0x38] sm:$0xff] (!%p5980_p5)  ;;  %v864_v14 = vld [vmem:[#allocation6 + $0x40] sm:$0xff] (!%p5980_p5)  ;;  %s5982_s9 = sld [smem:[#allocation30_spill]] (!%p5980_p5) }
  0xf7   : > { %3810 = vmatprep.subr.bf16.mxu0 (!%p5980_p5), %v3809_v3  ;;  %4073 = vmatprep.subr.bf16.mxu1 (!%p5980_p5), %v3809_v3  ;;  %v3821_v13 = vpack.c.bf16 (!%p5980_p5), %v863_v12, %v862_v11  ;;  %v865_v15 = vld [vmem:[#allocation6 + $0x48] sm:$0xff] (!%p5980_p5)  ;;  %v866_v17 = vld [vmem:[#allocation6 + $0x50] sm:$0xff] (!%p5980_p5)  ;;  %v867_v18 = vld [vmem:[#allocation6 + $0x58] sm:$0xff] (!%p5980_p5) }
  0xf8   : > { %3812 = vmatpush3.bf16.msra.mxu0 (!%p5980_p5), %v3809_v3  ;;  %4081 = vmatpush3.bf16.msra.mxu1 (!%p5980_p5), %v3809_v3  ;;  %v3825_v16 = vpack.c.bf16 (!%p5980_p5), %v865_v15, %v864_v14  ;;  %v3829_v19 = vpack.c.bf16 (!%p5980_p5), %v867_v18, %v866_v17  ;;  %v868_v20 = vld [vmem:[#allocation6 + $0x60] sm:$0xff] (!%p5980_p5)  ;;  %v869_v21 = vld [vmem:[#allocation6 + $0x68] sm:$0xff] (!%p5980_p5)  ;;  %v870_v23 = vld [vmem:[#allocation6 + $0x70] sm:$0xff] (!%p5980_p5) }
  0xf9   : > { %3814 = vmatprep.subr.bf16.mxu0 (!%p5980_p5), %v3813_v5  ;;  %4074 = vmatprep.subr.bf16.mxu1 (!%p5980_p5), %v3813_v5  ;;  %v3833_v22 = vpack.c.bf16 (!%p5980_p5), %v869_v21, %v868_v20  ;;  %v871_v24 = vld [vmem:[#allocation6 + $0x78] sm:$0xff] (!%p5980_p5) }
  0xfa   : > { %v840_v9 = vld [vmem:[%s5981_s19] sm:$0xff] (!%p5980_p5)  ;;  %v3837_v25 = vpack.c.bf16 (!%p5980_p5), %v871_v24, %v870_v23  ;;  %v841_v26 = vld [vmem:[%s5981_s19 + $0x8] sm:$0xff] (!%p5980_p5)  ;;  %v842_v28 = vld [vmem:[%s5981_s19 + $0x10] sm:$0xff] (!%p5980_p5) }
  0xfb   : > { %v848_v10 = vld [vmem:[%s5981_s19 + $0x40] sm:$0xff] (!%p5980_p5)  ;;  %3400 = vmatprep.mubr.f32.mxu0 (!%p5980_p5), %v840_v9  ;;  %v849_v27 = vld [vmem:[%s5981_s19 + $0x48] sm:$0xff] (!%p5980_p5)  ;;  %v850_v29 = vld [vmem:[%s5981_s19 + $0x50] sm:$0xff] (!%p5980_p5) }
  0xfc   : > { %3412 = vmatprep.mubr.f32.mxu1 (!%p5980_p5), %v848_v10  ;;  %3816 = vmatpush3.bf16.msra.mxu0 (!%p5980_p5), %v3813_v5  ;;  %v843_v30 = vld [vmem:[%s5981_s19 + $0x18] sm:$0xff] (!%p5980_p5)  ;;  %v844_v32 = vld [vmem:[%s5981_s19 + $0x20] sm:$0xff] (!%p5980_p5)  ;;  %v845_v34 = vld [vmem:[%s5981_s19 + $0x28] sm:$0xff] (!%p5980_p5) }
  0xfd   : > { %4082 = vmatpush3.bf16.msra.mxu1 %v3813_v5  ;;  %3818 = vmatprep.subr.bf16.mxu0 %v3817_v8  ;;  %v851_v31 = vld [vmem:[%s5981_s19 + $0x58] sm:$0xff]  ;;  %v852_v33 = vld [vmem:[%s5981_s19 + $0x60] sm:$0xff]  ;;  %v853_v35 = vld [vmem:[%s5981_s19 + $0x68] sm:$0xff] }
  0xfe   : > { %4075 = vmatprep.subr.bf16.mxu1 %v3817_v8  ;;  %v846_v36 = vld [vmem:[%s5981_s19 + $0x30] sm:$0xff]  ;;  %v847_v38 = vld [vmem:[%s5981_s19 + $0x38] sm:$0xff]  ;;  %v3042_v40 = vld [vmem:[%s5982_s9] ss:$0 sm:$0xff] }
  0xff   : > { %v854_v37 = vld [vmem:[%s5981_s19 + $0x70] sm:$0xff]  ;;  %v855_v39 = vld [vmem:[%s5981_s19 + $0x78] sm:$0xff] }
 0x100   : > { %3820 = vmatpush3.bf16.msra.mxu0 %v3817_v8 }
 0x101   : > { %4083 = vmatpush3.bf16.msra.mxu1 %v3817_v8  ;;  %3822 = vmatprep.subr.bf16.mxu0 %v3821_v13 }
 0x102   : > { %4076 = vmatprep.subr.bf16.mxu1 %v3821_v13 }
 0x104   : > { %3824 = vmatpush3.bf16.msra.mxu0 %v3821_v13 }
 0x105   : > { %4084 = vmatpush3.bf16.msra.mxu1 %v3821_v13  ;;  %3826 = vmatprep.subr.bf16.mxu0 %v3825_v16 }
 0x106   : > { %4077 = vmatprep.subr.bf16.mxu1 %v3825_v16 }
 0x108   : > { %3828 = vmatpush3.bf16.msra.mxu0 %v3825_v16 }
 0x109   : > { %4085 = vmatpush3.bf16.msra.mxu1 %v3825_v16  ;;  %3830 = vmatprep.subr.bf16.mxu0 %v3829_v19 }
 0x10a   : > { %4078 = vmatprep.subr.bf16.mxu1 %v3829_v19 }
 0x10c   : > { %3832 = vmatpush3.bf16.msra.mxu0 %v3829_v19 }
 0x10d   : > { %4086 = vmatpush3.bf16.msra.mxu1 %v3829_v19  ;;  %3834 = vmatprep.subr.bf16.mxu0 %v3833_v22 }
 0x10e   : > { %4079 = vmatprep.subr.bf16.mxu1 %v3833_v22 }
 0x110   : > { %3836 = vmatpush3.bf16.msra.mxu0 %v3833_v22 }
 0x111   : > { %4087 = vmatpush3.bf16.msra.mxu1 %v3833_v22  ;;  %3838 = vmatprep.subr.bf16.mxu0 %v3837_v25 }
 0x112   : > { %4080 = vmatprep.subr.bf16.mxu1 %v3837_v25 }
 0x114   : > { %3840 = vmatpush3.bf16.msra.mxu0 %v3837_v25 }
 0x115   : > { %4088 = vmatpush3.bf16.msra.mxu1 %v3837_v25 }
 0x117   : > { %3401 = vmatmul.mubr.f32.vlgmr.msra.gmra.mrb[0].mxu0 %v841_v26 }
 0x118   : > { %3413 = vmatmul.mubr.f32.vlgmr.msra.gmra.mrb[0].mxu1 %v849_v27  ;;  %3403 = vmatprep.mubr.f32.mxu0 %v842_v28 }
 0x119   : > { %3415 = vmatprep.mubr.f32.mxu1 %v850_v29 }
 0x11b   : > { %3404 = vmatmul.mubr.f32.gmra.mrb[2].mxu0 %v843_v30 }
 0x11c   : > { %3416 = vmatmul.mubr.f32.gmra.mrb[2].mxu1 %v851_v31  ;;  %3406 = vmatprep.mubr.f32.mxu0 %v844_v32 }
 0x11d   : > { %3418 = vmatprep.mubr.f32.mxu1 %v852_v33 }
 0x11f   : > { %3407 = vmatmul.mubr.f32.gmra.mrb[4].mxu0 %v845_v34 }
 0x120   : > { %3419 = vmatmul.mubr.f32.gmra.mrb[4].mxu1 %v853_v35  ;;  %3409 = vmatprep.mubr.f32.mxu0 %v846_v36 }
 0x121   : > { %3421 = vmatprep.mubr.f32.mxu1 %v854_v37 }
 0x123   : > { %3410 = vmatmul.mubr.f32.gmra.mrb[6].mxu0 %v847_v38 }
 0x124   : > { %3422 = vmatmul.mubr.f32.gmra.mrb[6].mxu1 %v855_v39 }
 0x1ea   : > { %v3402_v41 = vpop.f32.mrb[0].mxu0 }
 0x1eb   : > { %v3414_v42 = vpop.f32.mrb[0].mxu1  ;;  %v951_v43 = vadd.f32 %v3402_v41, %v3042_v40  ;;  %v945_v45 = vpop.f32.mrb[1].mxu0 }
 0x1ec   : > { %v991_v44 = vadd.f32 %v3414_v42, %v3042_v40  ;;  %v985_v46 = vpop.f32.mrb[1].mxu1  ;;  %v946_v47 = vadd.f32 %v3042_v40, %v945_v45 }
 0x1ed   : > { %v986_v48 = vadd.f32 %v3042_v40, %v985_v46  ;;  %1025 = vst [vmem:[#allocation2 + $0x8] sm:$0xff] %v951_v43 }
 0x1ee   : > { %1033 = vst [vmem:[#allocation2 + $0x48] sm:$0xff] %v991_v44  ;;  %1024 = vst [vmem:[#allocation2] sm:$0xff] %v946_v47  ;;  %v3405_v49 = vpop.f32.mrb[2].mxu0 }
 0x1ef   : > { %1032 = vst [vmem:[#allocation2 + $0x40] sm:$0xff] %v986_v48  ;;  %v3417_v50 = vpop.f32.mrb[2].mxu1  ;;  %v961_v51 = vadd.f32 %v3405_v49, %v3042_v40  ;;  %v955_v53 = vpop.f32.mrb[3].mxu0 }
 0x1f0   : > { %v1001_v52 = vadd.f32 %v3417_v50, %v3042_v40  ;;  %v995_v54 = vpop.f32.mrb[3].mxu1  ;;  %v956_v55 = vadd.f32 %v3042_v40, %v955_v53 }
 0x1f1   : > { %v996_v56 = vadd.f32 %v3042_v40, %v995_v54  ;;  %1027 = vst [vmem:[#allocation2 + $0x18] sm:$0xff] %v961_v51 }
 0x1f2   : > { %1035 = vst [vmem:[#allocation2 + $0x58] sm:$0xff] %v1001_v52  ;;  %1026 = vst [vmem:[#allocation2 + $0x10] sm:$0xff] %v956_v55  ;;  %v3408_v57 = vpop.f32.mrb[4].mxu0 }
 0x1f3   : > { %1034 = vst [vmem:[#allocation2 + $0x50] sm:$0xff] %v996_v56  ;;  %v3420_v58 = vpop.f32.mrb[4].mxu1  ;;  %v971_v59 = vadd.f32 %v3408_v57, %v3042_v40  ;;  %v965_v61 = vpop.f32.mrb[5].mxu0 }
 0x1f4   : > { %v1011_v60 = vadd.f32 %v3420_v58, %v3042_v40  ;;  %v1005_v62 = vpop.f32.mrb[5].mxu1  ;;  %v966_v63 = vadd.f32 %v3042_v40, %v965_v61 }
 0x1f5   : > { %v1006_v0 = vadd.f32 %v3042_v40, %v1005_v62  ;;  %1029 = vst [vmem:[#allocation2 + $0x28] sm:$0xff] %v971_v59 }
 0x1f6   : > { %1037 = vst [vmem:[#allocation2 + $0x68] sm:$0xff] %v1011_v60  ;;  %1028 = vst [vmem:[#allocation2 + $0x20] sm:$0xff] %v966_v63  ;;  %v3411_v1 = vpop.f32.mrb[6].mxu0 }
 0x1f7   : > { %1036 = vst [vmem:[#allocation2 + $0x60] sm:$0xff] %v1006_v0  ;;  %v3423_v2 = vpop.f32.mrb[6].mxu1  ;;  %v981_v3 = vadd.f32 %v3411_v1, %v3042_v40  ;;  %v975_v5 = vpop.f32.mrb[7].mxu0 }
 0x1f8   : > { %v1021_v4 = vadd.f32 %v3423_v2, %v3042_v40  ;;  %v1015_v6 = vpop.f32.mrb[7].mxu1  ;;  %v976_v7 = vadd.f32 %v3042_v40, %v975_v5 }
 0x1f9   : > { %v1016_v8 = vadd.f32 %v3042_v40, %v1015_v6  ;;  %1031 = vst [vmem:[#allocation2 + $0x38] sm:$0xff] %v981_v3 }
 0x1fa   : > { %1039 = vst [vmem:[#allocation2 + $0x78] sm:$0xff] %v1021_v4  ;;  %1030 = vst [vmem:[#allocation2 + $0x30] sm:$0xff] %v976_v7 }
 0x1fb   : > { %1038 = vst [vmem:[#allocation2 + $0x70] sm:$0xff] %v1016_v8 }
 0x1fc PF: > { %s5983_s21 = sld [smem:[#allocation25_spill]]  ;;  %v4600_v11 = vmov 0   ;;  %v1072_v14 = vld [vmem:[%s4999_s7] sm:$0xff]  ;;  %v1073_v15 = vld [vmem:[%s4999_s7 + $0x8] sm:$0xff]  ;;  %v1074_v17 = vld [vmem:[%s4999_s7 + $0x10] sm:$0xff]  ;;  %s5984_s18 = sld [smem:[#allocation26_spill]] }
 0x1fd   : > { %4229 = vset.pattern.permute.xlu1 %v4600_v11  ;;  %4228 = vset.pattern.permute.xlu0 %v4600_v11  ;;  %v3841_v16 = vpack.c.bf16 %v1073_v15, %v1072_v14  ;;  %v1075_v18 = vld [vmem:[%s4999_s7 + $0x18] sm:$0xff]  ;;  %v1076_v22 = vld [vmem:[%s4999_s7 + $0x20] sm:$0xff]  ;;  %v1077_v23 = vld [vmem:[%s4999_s7 + $0x28] sm:$0xff]  ;;  %s5985_s13 = sld [smem:[#allocation28_spill]]  ;;  %p3112_p13 = scmp.ne.s32.totalorder %s4731_s2, 2 }
 0x1fe   : > { %v3845_v21 = vpack.c.bf16 %v1075_v18, %v1074_v17  ;;  %v1056_v24 = vld [vmem:[#allocation3] sm:$0xff]  ;;  %v3849_v27 = vpack.c.bf16 %v1077_v23, %v1076_v22  ;;  %v1078_v28 = vld [vmem:[%s4999_s7 + $0x30] sm:$0xff]  ;;  %v1079_v29 = vld [vmem:[%s4999_s7 + $0x38] sm:$0xff]  ;;  %s5990_s24 = sld [smem:[#allocation31_spill]] (!%p3112_p13)  ;;  %s5991_s25 = sld [smem:[#allocation32_spill]] (!%p3112_p13) }
 0x1ff   : > { %3842 = vmatprep.subr.bf16.mxu0 %v3841_v16  ;;  %3456 = vmatprep.mubr.f32.mxu0 %v1056_v24  ;;  %v3853_v32 = vpack.c.bf16 %v1079_v29, %v1078_v28  ;;  %v1080_v33 = vld [vmem:[%s4999_s7 + $0x40] sm:$0xff]  ;;  %v1081_v34 = vld [vmem:[%s4999_s7 + $0x48] sm:$0xff]  ;;  %v1082_v38 = vld [vmem:[%s4999_s7 + $0x50] sm:$0xff] }
 0x200   : > { %3844 = vmatpush3.bf16.msra.mxu0 %v3841_v16  ;;  %v3857_v37 = vpack.c.bf16 %v1081_v34, %v1080_v33  ;;  %v1083_v39 = vld [vmem:[%s4999_s7 + $0x58] sm:$0xff]  ;;  %v1084_v43 = vld [vmem:[%s4999_s7 + $0x60] sm:$0xff]  ;;  %v1085_v44 = vld [vmem:[%s4999_s7 + $0x68] sm:$0xff] }
 0x201   : > { %3846 = vmatprep.subr.bf16.mxu0 %v3845_v21  ;;  %v3861_v42 = vpack.c.bf16 %v1083_v39, %v1082_v38  ;;  %v3865_v47 = vpack.c.bf16 %v1085_v44, %v1084_v43  ;;  %v1086_v48 = vld [vmem:[%s4999_s7 + $0x70] sm:$0xff]  ;;  %v1087_v49 = vld [vmem:[%s4999_s7 + $0x78] sm:$0xff]  ;;  %v5150_v51 = vld [vmem:[#allocation2] sm:$0xff] }
 0x202   : > { %v1237_v9 = vld [vmem:[%s5983_s21 + $0x10] sm:$0xff]  ;;  %v1235_v10 = vld [vmem:[%s5983_s21] sm:$0xff]  ;;  %v1238_v12 = vld [vmem:[%s5983_s21 + $0x18] sm:$0xff]  ;;  %v3869_v50 = vpack.c.bf16 %v1087_v49, %v1086_v48 }
 0x203   : > { %1258 = vperm.xlu1 %4229, %v1237_v9   ;;  %1252 = vperm.xlu0 %4228, %v1235_v10   ;;  %v1236_v13 = vld [vmem:[%s5983_s21 + $0x8] sm:$0xff]  ;;  %v1239_v20 = vld [vmem:[%s5983_s21 + $0x20] sm:$0xff]  ;;  %v1242_v25 = vld [vmem:[%s5983_s21 + $0x38] sm:$0xff] }
 0x204   : > { %v1240_v19 = vld [vmem:[%s5983_s21 + $0x28] sm:$0xff]  ;;  %v1241_v26 = vld [vmem:[%s5983_s21 + $0x30] sm:$0xff]  ;;  %3848 = vmatpush3.bf16.msra.mxu0 %v3845_v21  ;;  %v1243_v31 = vld [vmem:[%s5983_s21 + $0x40] sm:$0xff] }
 0x205   : > { %v1244_v30 = vld [vmem:[%s5983_s21 + $0x48] sm:$0xff]  ;;  %3850 = vmatprep.subr.bf16.mxu0 %v3849_v27  ;;  %v1246_v35 = vld [vmem:[%s5983_s21 + $0x58] sm:$0xff]  ;;  %v1245_v36 = vld [vmem:[%s5983_s21 + $0x50] sm:$0xff] }
 0x206   : > { %v1248_v40 = vld [vmem:[%s5983_s21 + $0x68] sm:$0xff]  ;;  %v1247_v41 = vld [vmem:[%s5983_s21 + $0x60] sm:$0xff]  ;;  %v1250_v45 = vld [vmem:[%s5983_s21 + $0x78] sm:$0xff] }
 0x207   : > { %1261 = vperm.xlu1 %4229, %v1238_v12   ;;  %1255 = vperm.xlu0 %4228, %v1236_v13   ;;  %v1249_v46 = vld [vmem:[%s5983_s21 + $0x70] sm:$0xff]  ;;  %v5152_v52 = vld [vmem:[#allocation2 + $0x8] sm:$0xff]  ;;  %v5158_v55 = vld [vmem:[#allocation2 + $0x18] sm:$0xff] }
 0x208   : > { %3852 = vmatpush3.bf16.msra.mxu0 %v3849_v27  ;;  %v3873_v53 = vpack.c.bf16 %v5152_v52, %v5150_v51  ;;  %v5156_v54 = vld [vmem:[#allocation2 + $0x10] sm:$0xff]  ;;  %v1057_v56 = vld [vmem:[#allocation3 + $0x8] sm:$0xff]  ;;  %v5162_v59 = vld [vmem:[#allocation2 + $0x20] sm:$0xff]  ;;  %v1811_v48 = vmul.f32 %v5152_v52, %v5152_v52 }
 0x209   : > { %3854 = vmatprep.subr.bf16.mxu0 %v3853_v32  ;;  %v1058_v57 = vld [vmem:[#allocation3 + $0x10] sm:$0xff]  ;;  %v3877_v58 = vpack.c.bf16 %v5158_v55, %v5156_v54  ;;  %v5164_v60 = vld [vmem:[#allocation2 + $0x28] sm:$0xff]  ;;  %v1059_v61 = vld [vmem:[#allocation3 + $0x18] sm:$0xff]  ;;  %v1812_v49 = vmul.f32 %v5156_v54, %v5156_v54 }
 0x20a   : > { %v1060_v62 = vld [vmem:[#allocation3 + $0x20] sm:$0xff]  ;;  %v3881_v63 = vpack.c.bf16 %v5164_v60, %v5162_v59  ;;  %v5168_v0 = vld [vmem:[#allocation2 + $0x30] sm:$0xff]  ;;  %v5170_v1 = vld [vmem:[#allocation2 + $0x38] sm:$0xff] }
 0x20b   : > { %1267 = vperm.xlu1 %4229, %v1240_v19   ;;  %1264 = vperm.xlu0 %4228, %v1239_v20   ;;  %v1061_v2 = vld [vmem:[#allocation3 + $0x28] sm:$0xff]  ;;  %v1062_v3 = vld [vmem:[#allocation3 + $0x30] sm:$0xff]  ;;  %v3885_v4 = vpack.c.bf16 %v5170_v1, %v5168_v0  ;;  %v5174_v5 = vld [vmem:[#allocation2 + $0x40] sm:$0xff]  ;;  %v1816_v52 = vmul.f32 %v5168_v0, %v5168_v0  ;;  %v1817_v54 = vmul.f32 %v5170_v1, %v5170_v1 }
 0x20c   : > { %3856 = vmatpush3.bf16.msra.mxu0 %v3853_v32  ;;  %v5176_v6 = vld [vmem:[#allocation2 + $0x48] sm:$0xff]  ;;  %v1063_v7 = vld [vmem:[#allocation3 + $0x38] sm:$0xff]  ;;  %v1064_v8 = vld [vmem:[#allocation3 + $0x40] sm:$0xff] }
 0x20d   : > { %3858 = vmatprep.subr.bf16.mxu0 %v3857_v37  ;;  %v3889_v9 = vpack.c.bf16 %v5176_v6, %v5174_v5  ;;  %v5180_v10 = vld [vmem:[#allocation2 + $0x50] sm:$0xff]  ;;  %v5182_v11 = vld [vmem:[#allocation2 + $0x58] sm:$0xff]  ;;  %v1065_v12 = vld [vmem:[#allocation3 + $0x48] sm:$0xff] }
 0x20e   : > { %v1066_v13 = vld [vmem:[#allocation3 + $0x50] sm:$0xff]  ;;  %v3893_v14 = vpack.c.bf16 %v5182_v11, %v5180_v10  ;;  %v5186_v15 = vld [vmem:[#allocation2 + $0x60] sm:$0xff]  ;;  %v5188_v16 = vld [vmem:[#allocation2 + $0x68] sm:$0xff] }
 0x20f   : > { %1273 = vperm.xlu1 %4229, %v1242_v25   ;;  %1270 = vperm.xlu0 %4228, %v1241_v26   ;;  %v1067_v17 = vld [vmem:[#allocation3 + $0x58] sm:$0xff]  ;;  %v1068_v18 = vld [vmem:[#allocation3 + $0x60] sm:$0xff]  ;;  %v3897_v19 = vpack.c.bf16 %v5188_v16, %v5186_v15  ;;  %v5192_v20 = vld [vmem:[#allocation2 + $0x70] sm:$0xff]  ;;  %v1233_v26 = vlaneseq }
 0x210   : > { %3860 = vmatpush3.bf16.msra.mxu0 %v3857_v37  ;;  %v5194_v21 = vld [vmem:[#allocation2 + $0x78] sm:$0xff]  ;;  %v1069_v22 = vld [vmem:[#allocation3 + $0x68] sm:$0xff]  ;;  %v1070_v23 = vld [vmem:[#allocation3 + $0x70] sm:$0xff] }
 0x211   : > { %3862 = vmatprep.subr.bf16.mxu0 %v3861_v42  ;;  %v3901_v24 = vpack.c.bf16 %v5194_v21, %v5192_v20  ;;  %v1071_v25 = vld [vmem:[#allocation3 + $0x78] sm:$0xff]  ;;  %v1234_v27 = vand.u32 127, %v1233_v26 }
 0x213   : > { %1279 = vperm.xlu1 %4229, %v1244_v30   ;;  %1276 = vperm.xlu0 %4228, %v1243_v31   ;;  %v4601_v30 = vmov 1.0  }
 0x214   : > { %3864 = vmatpush3.bf16.msra.mxu0 %v3861_v42 }
 0x215   : > { %3866 = vmatprep.subr.bf16.mxu0 %v3865_v47 }
 0x217   : > { %1285 = vperm.xlu1 %4229, %v1246_v35   ;;  %1282 = vperm.xlu0 %4228, %v1245_v36  }
 0x218   : > { %3868 = vmatpush3.bf16.msra.mxu0 %v3865_v47  ;;  %v1810_v47 = vmul.f32 %v5150_v51, %v5150_v51 }
 0x219   : > { %3870 = vmatprep.subr.bf16.mxu0 %v3869_v50 }
 0x21b   : > { %1291 = vperm.xlu1 %4229, %v1248_v40   ;;  %1288 = vperm.xlu0 %4228, %v1247_v41  }
 0x21c   : > { %3872 = vmatpush3.bf16.msra.mxu0 %v3869_v50  ;;  %v1813_v50 = vmul.f32 %v5158_v55, %v5158_v55  ;;  %v1818_v55 = vmul.f32 %v5174_v5, %v5174_v5 }
 0x21d   : > { %3874 = vmatprep.subr.bf16.mxu0 %v3873_v53 }
 0x21f   : > { %1297 = vperm.xlu1 %4229, %v1250_v45   ;;  %1294 = vperm.xlu0 %4228, %v1249_v46   ;;  %v5214_v45 = vshrl.u32 %v1233_v26, 7  ;;  %v5219_v46 = vld [vmem:[%s5984_s18] ss:$0 sm:$0xff] }
 0x220   : > { %3457 = vmatmul.mubr.f32.vlgmr.msra.gmra.mrb[0].mxu0 %v1057_v56  ;;  %v1815_v56 = vmul.f32 %v5164_v60, %v5164_v60  ;;  %v5245_v60 = vld [vmem:[%s5985_s13] ss:$0 sm:$0xff] }
 0x221   : > { %3876 = vmatpush3.bf16.msra.mxu0 %v3873_v53  ;;  %3459 = vmatprep.mubr.f32.mxu0 %v1058_v57  ;;  %v1814_v53 = vmul.f32 %v5162_v59, %v5162_v59 }
 0x222   : > { %3878 = vmatprep.subr.bf16.mxu0 %v3877_v58 }
 0x224   : > { %3460 = vmatmul.mubr.f32.gmra.mrb[2].mxu0 %v1059_v61 }
 0x225   : > { %3880 = vmatpush3.bf16.msra.mxu0 %v3877_v58  ;;  %3462 = vmatprep.mubr.f32.mxu0 %v1060_v62 }
 0x226   : > { %3882 = vmatprep.subr.bf16.mxu0 %v3881_v63 }
 0x228   : > { %3463 = vmatmul.mubr.f32.gmra.mrb[4].mxu0 %v1061_v2 }
 0x229   : > { %3884 = vmatpush3.bf16.msra.mxu0 %v3881_v63  ;;  %3465 = vmatprep.mubr.f32.mxu0 %v1062_v3 }
 0x22a   : > { %3886 = vmatprep.subr.bf16.mxu0 %v3885_v4 }
 0x22c   : > { %3466 = vmatmul.mubr.f32.gmra.mrb[6].mxu0 %v1063_v7 }
 0x22d   : > { %3888 = vmatpush3.bf16.msra.mxu0 %v3885_v4  ;;  %3468 = vmatprep.mubr.f32.mxu0 %v1064_v8 }
 0x22e   : > { %3890 = vmatprep.subr.bf16.mxu0 %v3889_v9 }
 0x230   : > { %3469 = vmatmul.mubr.f32.gmra.mrb[8].mxu0 %v1065_v12 }
 0x231   : > { %3892 = vmatpush3.bf16.msra.mxu0 %v3889_v9  ;;  %3471 = vmatprep.mubr.f32.mxu0 %v1066_v13 }
 0x232   : > { %3894 = vmatprep.subr.bf16.mxu0 %v3893_v14 }
 0x234   : > { %3472 = vmatmul.mubr.f32.gmra.mrb[10].mxu0 %v1067_v17 }
 0x235   : > { %3896 = vmatpush3.bf16.msra.mxu0 %v3893_v14  ;;  %3474 = vmatprep.mubr.f32.mxu0 %v1068_v18 }
 0x236   : > { %3898 = vmatprep.subr.bf16.mxu0 %v3897_v19 }
 0x238   : > { %3475 = vmatmul.mubr.f32.gmra.mrb[12].mxu0 %v1069_v22 }
 0x239   : > { %3900 = vmatpush3.bf16.msra.mxu0 %v3897_v19  ;;  %3477 = vmatprep.mubr.f32.mxu0 %v1070_v23 }
 0x23a   : > { %3902 = vmatprep.subr.bf16.mxu0 %v3901_v24 }
 0x23c   : > { %3478 = vmatmul.mubr.f32.gmra.mrb[14].mxu0 %v1071_v25 }
 0x23d   : > { %3904 = vmatpush3.bf16.msra.mxu0 %v3901_v24 }
 0x23e   : > { %1826 = vadd.xlane.f32.xlu0 %v1810_v47 }
 0x242   : > { %1830 = vadd.xlane.f32.xlu0 %v1812_v49 }
 0x243   : > { %1828 = vadd.xlane.f32.xlu1 %v1811_v48 }
 0x246   : > { %1832 = vadd.xlane.f32.xlu0 %v1813_v50 }
 0x24a   : > { %1834 = vadd.xlane.f32.xlu0 %v1814_v53 }
 0x24e   : > { %1836 = vadd.xlane.f32.xlu0 %v1815_v56 }
 0x252   : > { %1838 = vadd.xlane.f32.xlu0 %v1816_v52 }
 0x256   : > { %1840 = vadd.xlane.f32.xlu0 %v1817_v54 }
 0x25a   : > { %1842 = vadd.xlane.f32.xlu0 %v1818_v55 }
 0x282   : > { %v1259_v28 = vpop.permute.xlu1 %1258  ;;  %v1253_v29 = vpop.permute.xlu0 %1252 }
 0x283   : > { %vm1299_vm0 = vcmp.eq.s32.totalorder %v1253_v29, %v1234_v27  ;;  %vm1301_vm1 = vcmp.eq.s32.totalorder %v1259_v28, %v1234_v27 }
 0x284   : > { %3512 = vmatprep.mubr.msk.f32.mxu0 %vm1299_vm0, %v4601_v30  ;;  %vm1369_vm0 = vcmp.eq.s32.totalorder %v5219_v46, %v5214_v45 }
 0x285   : > { %3568 = vmatprep.mubr.msk.f32.mxu1 %vm1369_vm0, %v4601_v30 }
 0x286   : > { %v1262_v31 = vpop.permute.xlu1 %1261  ;;  %v1256_v32 = vpop.permute.xlu0 %1255 }
 0x287   : > { %vm1300_vm2 = vcmp.eq.s32.totalorder %v1256_v32, %v1234_v27  ;;  %vm1302_vm3 = vcmp.eq.s32.totalorder %v1262_v31, %v1234_v27 }
 0x288   : > { %3513 = vmatmul.mubr.msk.f32.vlgmr.msra.gmra.mrb[0].mxu0 %vm1300_vm2, %v4601_v30 }
 0x289   : > { %3515 = vmatprep.mubr.msk.f32.mxu0 %vm1301_vm1, %v4601_v30 }
 0x28a   : > { %v1268_v33 = vpop.permute.xlu1 %1267  ;;  %v1265_v34 = vpop.permute.xlu0 %1264 }
 0x28b   : > { %vm1303_vm4 = vcmp.eq.s32.totalorder %v1265_v34, %v1234_v27  ;;  %vm1304_vm5 = vcmp.eq.s32.totalorder %v1268_v33, %v1234_v27 }
 0x28c   : > { %3516 = vmatmul.mubr.msk.f32.gmra.mrb[2].mxu0 %vm1302_vm3, %v4601_v30 }
 0x28d   : > { %3518 = vmatprep.mubr.msk.f32.mxu0 %vm1303_vm4, %v4601_v30 }
 0x28e   : > { %v1274_v35 = vpop.permute.xlu1 %1273  ;;  %v1271_v36 = vpop.permute.xlu0 %1270 }
 0x28f   : > { %vm1305_vm6 = vcmp.eq.s32.totalorder %v1271_v36, %v1234_v27  ;;  %vm1306_vm7 = vcmp.eq.s32.totalorder %v1274_v35, %v1234_v27 }
 0x290   : > { %3519 = vmatmul.mubr.msk.f32.gmra.mrb[4].mxu0 %vm1304_vm5, %v4601_v30 }
 0x291   : > { %3521 = vmatprep.mubr.msk.f32.mxu0 %vm1305_vm6, %v4601_v30 }
 0x292   : > { %v1280_v37 = vpop.permute.xlu1 %1279  ;;  %v1277_v38 = vpop.permute.xlu0 %1276 }
 0x293   : > { %vm1307_vm8 = vcmp.eq.s32.totalorder %v1277_v38, %v1234_v27  ;;  %vm1308_vm9 = vcmp.eq.s32.totalorder %v1280_v37, %v1234_v27 }
 0x294   : > { %3522 = vmatmul.mubr.msk.f32.gmra.mrb[6].mxu0 %vm1306_vm7, %v4601_v30 }
 0x295   : > { %3524 = vmatprep.mubr.msk.f32.mxu0 %vm1307_vm8, %v4601_v30 }
 0x296   : > { %v1286_v39 = vpop.permute.xlu1 %1285  ;;  %v1283_v40 = vpop.permute.xlu0 %1282 }
 0x297   : > { %vm1309_vm10 = vcmp.eq.s32.totalorder %v1283_v40, %v1234_v27  ;;  %vm1310_vm11 = vcmp.eq.s32.totalorder %v1286_v39, %v1234_v27 }
 0x298   : > { %3525 = vmatmul.mubr.msk.f32.gmra.mrb[8].mxu0 %vm1308_vm9, %v4601_v30 }
 0x299   : > { %3527 = vmatprep.mubr.msk.f32.mxu0 %vm1309_vm10, %v4601_v30 }
 0x29a   : > { %v1292_v41 = vpop.permute.xlu1 %1291  ;;  %v1289_v42 = vpop.permute.xlu0 %1288 }
 0x29b   : > { %vm1311_vm12 = vcmp.eq.s32.totalorder %v1289_v42, %v1234_v27  ;;  %vm1312_vm13 = vcmp.eq.s32.totalorder %v1292_v41, %v1234_v27 }
 0x29c   : > { %3528 = vmatmul.mubr.msk.f32.gmra.mrb[10].mxu0 %vm1310_vm11, %v4601_v30 }
 0x29d   : > { %3530 = vmatprep.mubr.msk.f32.mxu0 %vm1311_vm12, %v4601_v30 }
 0x29e   : > { %v1295_v43 = vpop.permute.xlu0 %1294  ;;  %v1298_v44 = vpop.permute.xlu1 %1297 }
 0x29f   : > { %vm1313_vm14 = vcmp.eq.s32.totalorder %v1295_v43, %v1234_v27  ;;  %vm1314_vm15 = vcmp.eq.s32.totalorder %v1298_v44, %v1234_v27 }
 0x2a0   : > { %3531 = vmatmul.mubr.msk.f32.gmra.mrb[12].mxu0 %vm1312_vm13, %v4601_v30 }
 0x2a1   : > { %3533 = vmatprep.mubr.msk.f32.mxu0 %vm1313_vm14, %v4601_v30 }
 0x2a4   : > { %3534 = vmatmul.mubr.msk.f32.gmra.mrb[14].mxu0 %vm1314_vm15, %v4601_v30 }
 0x35b   : > { %v3514_v57 = vpop.f32.mrb[0].mxu0 }
 0x35c   : > { %v1563_v58 = vmax.f32 %v3514_v57, 0.0  ;;  %v1483_v59 = vpop.f32.mrb[1].mxu0 }
 0x35d   : > { %v1562_v61 = vmax.f32 %v1483_v59, 0.0 }
 0x35e   : > { %v1579_v62 = vadd.f32 1e-07, %v1563_v58 }
 0x35f   : > { %v1578_v63 = vadd.f32 1e-07, %v1562_v61  ;;  %v3517_v0 = vpop.f32.mrb[2].mxu0 }
 0x360   : > { %v1602_v2 = vmul.f32 %v5245_v60, %v1579_v62  ;;  %v1565_v1 = vmax.f32 %v3517_v0, 0.0  ;;  %v1493_v3 = vpop.f32.mrb[3].mxu0 }
 0x361   : > { %v1601_v4 = vmul.f32 %v5245_v60, %v1578_v63  ;;  %v1564_v5 = vmax.f32 %v1493_v3, 0.0 }
 0x362   : > { %v1581_v7 = vadd.f32 1e-07, %v1565_v1 }
 0x363   : > { %v1580_v8 = vadd.f32 1e-07, %v1564_v5  ;;  %v3520_v9 = vpop.f32.mrb[4].mxu0  ;;  %v3905_v12 = vpack.c.bf16 %v1602_v2, %v1601_v4 }
 0x364   : > { %v1604_v13 = vmul.f32 %v5245_v60, %v1581_v7  ;;  %v1567_v14 = vmax.f32 %v3520_v9, 0.0  ;;  %v1503_v17 = vpop.f32.mrb[5].mxu0 }
 0x365   : > { %v1603_v18 = vmul.f32 %v5245_v60, %v1580_v8  ;;  %v1566_v19 = vmax.f32 %v1503_v17, 0.0  ;;  %3906 = vmatprep.subr.bf16.mxu1 %v3905_v12 }
 0x366   : > { %v1583_v22 = vadd.f32 1e-07, %v1567_v14  ;;  %3908 = vmatpush3.bf16.msra.mxu1 %v3905_v12 }
 0x367   : > { %v1582_v23 = vadd.f32 1e-07, %v1566_v19  ;;  %v3523_v24 = vpop.f32.mrb[6].mxu0  ;;  %v3909_v25 = vpack.c.bf16 %v1604_v13, %v1603_v18  ;;  %v1349_v18 = vadd.s32 8, %v5214_v45 }
 0x368   : > { %v1606_v26 = vmul.f32 %v5245_v60, %v1583_v22  ;;  %v1569_v27 = vmax.f32 %v3523_v24, 0.0  ;;  %v1513_v28 = vpop.f32.mrb[7].mxu0  ;;  %v1350_v22 = vadd.s32 16, %v5214_v45  ;;  %v1352_v24 = vadd.s32 32, %v5214_v45 }
 0x369   : > { %v1605_v29 = vmul.f32 %v5245_v60, %v1582_v23  ;;  %v1568_v31 = vmax.f32 %v1513_v28, 0.0  ;;  %3910 = vmatprep.subr.bf16.mxu1 %v3909_v25  ;;  %vm1370_vm1 = vcmp.eq.s32.totalorder %v5219_v46, %v1349_v18  ;;  %v1351_v23 = vadd.s32 24, %v5214_v45 }
 0x36a   : > { %v1585_v32 = vadd.f32 1e-07, %v1569_v27  ;;  %3912 = vmatpush3.bf16.msra.mxu1 %v3909_v25  ;;  %vm1371_vm2 = vcmp.eq.s32.totalorder %v5219_v46, %v1350_v22  ;;  %vm1373_vm4 = vcmp.eq.s32.totalorder %v5219_v46, %v1352_v24  ;;  %v1354_v25 = vadd.s32 48, %v5214_v45  ;;  %v2081_v24 = vld [vmem:[%s5029_s3 + $0x60] sm:$0xff] }
 0x36b   : > { %v1584_v33 = vadd.f32 1e-07, %v1568_v31  ;;  %v3526_v34 = vpop.f32.mrb[8].mxu0  ;;  %v3913_v35 = vpack.c.bf16 %v1606_v26, %v1605_v29  ;;  %vm1372_vm3 = vcmp.eq.s32.totalorder %v5219_v46, %v1351_v23  ;;  %v1355_v26 = vadd.s32 56, %v5214_v45 }
 0x36c   : > { %v1608_v36 = vmul.f32 %v5245_v60, %v1585_v32  ;;  %v1571_v37 = vmax.f32 %v3526_v34, 0.0  ;;  %v1523_v38 = vpop.f32.mrb[9].mxu0  ;;  %vm1375_vm6 = vcmp.eq.s32.totalorder %v5219_v46, %v1354_v25  ;;  %v1356_v27 = vadd.s32 64, %v5214_v45 }
 0x36d   : > { %v1607_v39 = vmul.f32 %v5245_v60, %v1584_v33  ;;  %v1570_v40 = vmax.f32 %v1523_v38, 0.0  ;;  %3914 = vmatprep.subr.bf16.mxu1 %v3913_v35  ;;  %vm1376_vm7 = vcmp.eq.s32.totalorder %v5219_v46, %v1355_v26  ;;  %v1357_v28 = vadd.s32 72, %v5214_v45  ;;  %v2070_v38 = vld [vmem:[%s5029_s3 + $0x8] sm:$0xff] }
 0x36e   : > { %v1587_v41 = vadd.f32 1e-07, %v1571_v37  ;;  %3916 = vmatpush3.bf16.msra.mxu1 %v3913_v35  ;;  %vm1377_vm8 = vcmp.eq.s32.totalorder %v5219_v46, %v1356_v27  ;;  %v1358_v29 = vadd.s32 80, %v5214_v45  ;;  %v1359_v31 = vadd.s32 88, %v5214_v45  ;;  %v2069_v37 = vld [vmem:[%s5029_s3] sm:$0xff] }
 0x36f   : > { %v1586_v42 = vadd.f32 1e-07, %v1570_v40  ;;  %v3529_v43 = vpop.f32.mrb[10].mxu0  ;;  %v3917_v44 = vpack.c.bf16 %v1608_v36, %v1607_v39  ;;  %vm1378_vm9 = vcmp.eq.s32.totalorder %v5219_v46, %v1357_v28  ;;  %v1360_v32 = vadd.s32 96, %v5214_v45  ;;  %v1970_v36 = vld [vmem:[%s823_s5] sm:$0x1] }
 0x370   : > { %v1610_v47 = vmul.f32 %v5245_v60, %v1587_v41  ;;  %v1573_v48 = vmax.f32 %v3529_v43, 0.0  ;;  %v1533_v49 = vpop.f32.mrb[11].mxu0  ;;  %vm1379_vm10 = vcmp.eq.s32.totalorder %v5219_v46, %v1358_v29  ;;  %vm1380_vm11 = vcmp.eq.s32.totalorder %v5219_v46, %v1359_v31  ;;  %4121 = vpush %v1970_v36  ;;  %v2071_v39 = vld [vmem:[%s5029_s3 + $0x10] sm:$0xff]  ;;  %v2072_v40 = vld [vmem:[%s5029_s3 + $0x18] sm:$0xff]  ;;  %v2073_v43 = vld [vmem:[%s5029_s3 + $0x20] sm:$0xff] }
 0x371   : > { %v1609_v50 = vmul.f32 %v5245_v60, %v1586_v42  ;;  %v1572_v53 = vmax.f32 %v1533_v49, 0.0  ;;  %3918 = vmatprep.subr.bf16.mxu1 %v3917_v44  ;;  %v1361_v33 = vadd.s32 104, %v5214_v45  ;;  %vm1381_vm12 = vcmp.eq.s32.totalorder %v5219_v46, %v1360_v32  ;;  %v2083_v28 = vld [vmem:[%s5029_s3 + $0x70] sm:$0xff]  ;;  %v2084_v29 = vld [vmem:[%s5029_s3 + $0x78] sm:$0xff] }
 0x372   : > { %v1589_v56 = vadd.f32 1e-07, %v1573_v48  ;;  %3920 = vmatpush3.bf16.msra.mxu1 %v3917_v44  ;;  %v1362_v34 = vadd.s32 112, %v5214_v45  ;;  %v1363_v35 = vadd.s32 120, %v5214_v45  ;;  %v3937_v41 = vpack.c.bf16 %v2070_v38, %v2069_v37  ;;  %v2074_v44 = vld [vmem:[%s5029_s3 + $0x28] sm:$0xff]  ;;  %v2246_v38 = vld [vmem:[%s5031_s30] sm:$0xff] }
 0x373   : > { %v1588_v52 = vadd.f32 1e-07, %v1572_v53  ;;  %v3532_v54 = vpop.f32.mrb[12].mxu0  ;;  %v3921_v55 = vpack.c.bf16 %v1610_v47, %v1609_v50  ;;  %vm1382_vm13 = vcmp.eq.s32.totalorder %v5219_v46, %v1361_v33  ;;  %v3941_v42 = vpack.c.bf16 %v2072_v40, %v2071_v39  ;;  %v2247_v39 = vld [vmem:[%s5031_s30 + $0x8] sm:$0xff]  ;;  %v2248_v40 = vld [vmem:[%s5031_s30 + $0x10] sm:$0xff] }
 0x374   : > { %v1612_v57 = vmul.f32 %v5245_v60, %v1589_v56  ;;  %v1575_v58 = vmax.f32 %v3532_v54, 0.0  ;;  %v1543_v59 = vpop.f32.mrb[13].mxu0  ;;  %vm1383_vm14 = vcmp.eq.s32.totalorder %v5219_v46, %v1362_v34  ;;  %vm1384_vm15 = vcmp.eq.s32.totalorder %v5219_v46, %v1363_v35 }
 0x375   : > { %v1611_v61 = vmul.f32 %v5245_v60, %v1588_v52  ;;  %v1574_v62 = vmax.f32 %v1543_v59, 0.0  ;;  %3922 = vmatprep.subr.bf16.mxu1 %v3921_v55  ;;  %v1819_v53 = vmul.f32 %v5176_v6, %v5176_v6  ;;  %v1821_v59 = vmul.f32 %v5182_v11, %v5182_v11 }
 0x376   : > { %v1591_v63 = vadd.f32 1e-07, %v1575_v58  ;;  %3924 = vmatpush3.bf16.msra.mxu1 %v3921_v55  ;;  %v1820_v55 = vmul.f32 %v5180_v10, %v5180_v10  ;;  %v2075_v10 = vld [vmem:[%s5029_s3 + $0x30] sm:$0xff]  ;;  %v3965_v32 = vpack.c.bf16 %v2084_v29, %v2083_v28 }
 0x377   : > { %v1590_v0 = vadd.f32 1e-07, %v1574_v62  ;;  %v3535_v2 = vpop.f32.mrb[14].mxu0  ;;  %v3925_v1 = vpack.c.bf16 %v1612_v57, %v1611_v61 }
 0x378   : > { %v1614_v3 = vmul.f32 %v5245_v60, %v1591_v63  ;;  %v1577_v4 = vmax.f32 %v3535_v2, 0.0  ;;  %v1553_v5 = vpop.f32.mrb[15].mxu0  ;;  %v2076_v63 = vld [vmem:[%s5029_s3 + $0x38] sm:$0xff] }
 0x379   : > { %v1613_v7 = vmul.f32 %v5245_v60, %v1590_v0  ;;  %v1576_v8 = vmax.f32 %v1553_v5, 0.0  ;;  %3926 = vmatprep.subr.bf16.mxu1 %v3925_v1  ;;  %v1822_v0 = vmul.f32 %v5186_v15, %v5186_v15  ;;  %v2077_v5 = vld [vmem:[%s5029_s3 + $0x40] sm:$0xff]  ;;  %v1823_v15 = vmul.f32 %v5188_v16, %v5188_v16 }
 0x37a   : > { %v1593_v9 = vadd.f32 1e-07, %v1577_v4  ;;  %3928 = vmatpush3.bf16.msra.mxu1 %v3925_v1  ;;  %v3949_v1 = vpack.c.bf16 %v2076_v63, %v2075_v10  ;;  %v2256_v63 = vld [vmem:[%s5031_s30 + $0x50] sm:$0xff] }
 0x37b   : > { %v1592_v12 = vadd.f32 1e-07, %v1576_v8  ;;  %v3929_v13 = vpack.c.bf16 %v1614_v3, %v1613_v7  ;;  %v2078_v7 = vld [vmem:[%s5029_s3 + $0x48] sm:$0xff] }
 0x37c   : > { %v1616_v14 = vmul.f32 %v5245_v60, %v1593_v9  ;;  %v3953_v9 = vpack.c.bf16 %v2078_v7, %v2077_v5 }
 0x37d   : > { %v1615_v17 = vmul.f32 %v5245_v60, %v1592_v12  ;;  %3930 = vmatprep.subr.bf16.mxu1 %v3929_v13  ;;  %v1353_v60 = vadd.s32 40, %v5214_v45 }
 0x37e   : > { %3932 = vmatpush3.bf16.msra.mxu1 %v3929_v13  ;;  %v2079_v13 = vld [vmem:[%s5029_s3 + $0x50] sm:$0xff] }
 0x37f   : > { %v3933_v19 = vpack.c.bf16 %v1616_v14, %v1615_v17  ;;  %vm1374_vm5 = vcmp.eq.s32.totalorder %v5219_v46, %v1353_v60  ;;  %v3945_v46 = vpack.c.bf16 %v2074_v44, %v2073_v43  ;;  %v2080_v14 = vld [vmem:[%s5029_s3 + $0x58] sm:$0xff]  ;;  %v1824_v17 = vmul.f32 %v5192_v20, %v5192_v20  ;;  %v2082_v60 = vld [vmem:[%s5029_s3 + $0x68] sm:$0xff]  ;;  %v2250_v44 = vld [vmem:[%s5031_s30 + $0x20] sm:$0xff] }
 0x380   : > { %v1825_v20 = vmul.f32 %v5194_v21, %v5194_v21  ;;  %v3961_v26 = vpack.c.bf16 %v2082_v60, %v2081_v24 }
 0x381   : > { %3934 = vmatprep.subr.bf16.mxu1 %v3933_v19 }
 0x382   : > { %3936 = vmatpush3.bf16.msra.mxu1 %v3933_v19  ;;  %v3957_v19 = vpack.c.bf16 %v2080_v14, %v2079_v13  ;;  %v1829_v14 = vpop.xlane.xlu1 %1828 }
 0x383   : > { %3938 = vmatprep.subr.bf16.mxu1 %v3937_v41  ;;  %4230 = vrsqrt.f32 %v1829_v14  ;;  %vm1867_vm0 = vcmp.eq.f32.partialorder %v1829_v14, inf }
 0x385   : > { %3569 = vmatmul.mubr.msk.f32.vlgmr.msra.gmra.mrb[0].mxu1 %vm1370_vm1, %v4601_v30 }
 0x386   : > { %3571 = vmatprep.mubr.msk.f32.mxu1 %vm1371_vm2, %v4601_v30  ;;  %3940 = vmatpush3.bf16.msra.mxu1 %v3937_v41  ;;  %v5410_v41 = vpack.c.bf16 %v2247_v39, %v2246_v38  ;;  %vm1869_vm2 = vcmp.eq.f32.partialorder %v1829_v14, 0.0 }
 0x387   : > { %3942 = vmatprep.subr.bf16.mxu1 %v3941_v42 }
 0x388   : > { %3970 = vmatprep.subr.bf16.mxu0 %v5410_v41 }
 0x389   : > { %3572 = vmatmul.mubr.msk.f32.gmra.mrb[2].mxu1 %vm1372_vm3, %v4601_v30  ;;  %3972 = vmatpush3.bf16.msra.mxu0 %v5410_v41 }
 0x38a   : > { %3574 = vmatprep.mubr.msk.f32.mxu1 %vm1373_vm4, %v4601_v30  ;;  %3944 = vmatpush3.bf16.msra.mxu1 %v3941_v42  ;;  %v2249_v42 = vld [vmem:[%s5031_s30 + $0x18] sm:$0xff] }
 0x38b   : > { %3946 = vmatprep.subr.bf16.mxu1 %v3945_v46  ;;  %v5413_v43 = vpack.c.bf16 %v2249_v42, %v2248_v40 }
 0x38d   : > { %3575 = vmatmul.mubr.msk.f32.gmra.mrb[4].mxu1 %vm1374_vm5, %v4601_v30  ;;  %3974 = vmatprep.subr.bf16.mxu0 %v5413_v43 }
 0x38e   : > { %3577 = vmatprep.mubr.msk.f32.mxu1 %vm1375_vm6, %v4601_v30  ;;  %3948 = vmatpush3.bf16.msra.mxu1 %v3945_v46  ;;  %v2251_v46 = vld [vmem:[%s5031_s30 + $0x28] sm:$0xff] }
 0x38f   : > { %3950 = vmatprep.subr.bf16.mxu1 %v3949_v1  ;;  %3976 = vmatpush3.bf16.msra.mxu0 %v5413_v43 }
 0x391   : > { %3578 = vmatmul.mubr.msk.f32.gmra.mrb[6].mxu1 %vm1376_vm7, %v4601_v30 }
 0x392   : > { %3580 = vmatprep.mubr.msk.f32.mxu1 %vm1377_vm8, %v4601_v30  ;;  %3952 = vmatpush3.bf16.msra.mxu1 %v3949_v1 }
 0x393   : > { %3954 = vmatprep.subr.bf16.mxu1 %v3953_v9 }
 0x395   : > { %3581 = vmatmul.mubr.msk.f32.gmra.mrb[8].mxu1 %vm1378_vm9, %v4601_v30 }
 0x396   : > { %3583 = vmatprep.mubr.msk.f32.mxu1 %vm1379_vm10, %v4601_v30  ;;  %3956 = vmatpush3.bf16.msra.mxu1 %v3953_v9 }
 0x397   : > { %3958 = vmatprep.subr.bf16.mxu1 %v3957_v19 }
 0x399   : > { %3584 = vmatmul.mubr.msk.f32.gmra.mrb[10].mxu1 %vm1380_vm11, %v4601_v30 }
 0x39a   : > { %3586 = vmatprep.mubr.msk.f32.mxu1 %vm1381_vm12, %v4601_v30  ;;  %3960 = vmatpush3.bf16.msra.mxu1 %v3957_v19 }
 0x39b   : > { %3962 = vmatprep.subr.bf16.mxu1 %v3961_v26 }
 0x39d   : > { %3587 = vmatmul.mubr.msk.f32.gmra.mrb[12].mxu1 %vm1382_vm13, %v4601_v30 }
 0x39e   : > { %3589 = vmatprep.mubr.msk.f32.mxu1 %vm1383_vm14, %v4601_v30  ;;  %3964 = vmatpush3.bf16.msra.mxu1 %v3961_v26 }
 0x39f   : > { %3966 = vmatprep.subr.bf16.mxu1 %v3965_v32 }
 0x3a1   : > { %3590 = vmatmul.mubr.msk.f32.gmra.mrb[14].mxu1 %vm1384_vm15, %v4601_v30  ;;  %s4122_s5 = spop %4121 }
 0x3a2   : > { %3968 = vmatpush3.bf16.msra.mxu1 %v3965_v32 }
 0x3a3   : > { %4089 = vmatprep.subr.bf16.mxu1 %v5410_v41 }
 0x458   : > { %v5319_v30 = vpop.f32.mrb[0].mxu1 }
 0x459   : > { %v5321_v47 = vpop.f32.mrb[1].mxu1  ;;  %v1763_v48 = vmul.f32 %v5319_v30, %v5319_v30 }
 0x45a   : > { %v1762_v49 = vmul.f32 %v5321_v47, %v5321_v47 }
 0x45b   : > { %1780 = vadd.xlane.f32.xlu1 %v1763_v48  ;;  %v5421_v48 = vpack.c.bf16 %v2251_v46, %v2250_v44 }
 0x45c   : > { %1778 = vadd.xlane.f32.xlu0 %v1762_v49  ;;  %v5327_v50 = vpop.f32.mrb[2].mxu1  ;;  %v2252_v49 = vld [vmem:[%s5031_s30 + $0x30] sm:$0xff] }
 0x45d   : > { %v5331_v56 = vpop.f32.mrb[3].mxu1  ;;  %v1765_v52 = vmul.f32 %v5327_v50, %v5327_v50  ;;  %3978 = vmatprep.subr.bf16.mxu0 %v5421_v48 }
 0x45e   : > { %v1764_v57 = vmul.f32 %v5331_v56, %v5331_v56  ;;  %3980 = vmatpush3.bf16.msra.mxu0 %v5421_v48 }
 0x45f   : > { %1784 = vadd.xlane.f32.xlu1 %v1765_v52  ;;  %v5425_v52 = vpop.xlane.xlu0 %1826 }
 0x460   : > { %1844 = vadd.xlane.f32.xlu0 %v1819_v53  ;;  %v5335_v54 = vpop.f32.mrb[4].mxu1  ;;  %v2253_v53 = vld [vmem:[%s5031_s30 + $0x38] sm:$0xff]  ;;  %4232 = vrsqrt.f32 %v5425_v52  ;;  %vm1860_vm1 = vcmp.eq.f32.partialorder %v5425_v52, inf  ;;  %vm1862_vm3 = vcmp.eq.f32.partialorder %v5425_v52, 0.0 }
 0x461   : > { %v5341_v58 = vpop.f32.mrb[5].mxu1  ;;  %v1767_v6 = vmul.f32 %v5335_v54, %v5335_v54 }
 0x462   : > { %v1766_v3 = vmul.f32 %v5341_v58, %v5341_v58 }
 0x463   : > { %1782 = vadd.xlane.f32.xlu1 %v1764_v57  ;;  %v2254_v57 = vld [vmem:[%s5031_s30 + $0x40] sm:$0xff]  ;;  %v5437_v10 = vpop.xlane.xlu0 %1830 }
 0x464   : > { %1846 = vadd.xlane.f32.xlu0 %v1820_v55  ;;  %v5347_v61 = vpop.f32.mrb[6].mxu1  ;;  %v5429_v55 = vpack.c.bf16 %v2253_v53, %v2252_v49  ;;  %v5482_v49 = vstv %s4122_s5  ;;  %vm1874_vm5 = vcmp.eq.f32.partialorder %v5437_v10, inf  ;;  %vm1876_vm7 = vcmp.eq.f32.partialorder %v5437_v10, 0.0 }
 0x465   : > { %v5349_v62 = vpop.f32.mrb[7].mxu1  ;;  %v1769_v4 = vmul.f32 %v5347_v61, %v5347_v61 }
 0x466   : > { %v1768_v16 = vmul.f32 %v5349_v62, %v5349_v62  ;;  %3982 = vmatprep.subr.bf16.mxu0 %v5429_v55 }
 0x467   : > { %1788 = vadd.xlane.f32.xlu1 %v1767_v6  ;;  %v2255_v6 = vld [vmem:[%s5031_s30 + $0x48] sm:$0xff]  ;;  %3984 = vmatpush3.bf16.msra.mxu0 %v5429_v55  ;;  %v5447_v5 = vpop.xlane.xlu0 %1832 }
 0x468   : > { %1848 = vadd.xlane.f32.xlu0 %v1821_v59  ;;  %v5355_v2 = vpop.f32.mrb[8].mxu1  ;;  %v5435_v59 = vpack.c.bf16 %v2255_v6, %v2254_v57  ;;  %4234 = vrsqrt.f32 %v5447_v5  ;;  %vm1881_vm4 = vcmp.eq.f32.partialorder %v5447_v5, inf  ;;  %vm1883_vm6 = vcmp.eq.f32.partialorder %v5447_v5, 0.0 }
 0x469   : > { %v5359_v11 = vpop.f32.mrb[9].mxu1  ;;  %v1771_v23 = vmul.f32 %v5355_v2, %v5355_v2  ;;  %4236 = vrsqrt.f32 %v5437_v10 }
 0x46a   : > { %v1770_v33 = vmul.f32 %v5359_v11, %v5359_v11  ;;  %3986 = vmatprep.subr.bf16.mxu0 %v5435_v59 }
 0x46b   : > { %1786 = vadd.xlane.f32.xlu1 %v1766_v3  ;;  %v2258_v3 = vld [vmem:[%s5031_s30 + $0x60] sm:$0xff]  ;;  %3988 = vmatpush3.bf16.msra.mxu0 %v5435_v59 }
 0x46c   : > { %1850 = vadd.xlane.f32.xlu0 %v1822_v0  ;;  %v5367_v8 = vpop.f32.mrb[10].mxu1  ;;  %v2257_v0 = vld [vmem:[%s5031_s30 + $0x58] sm:$0xff] }
 0x46d   : > { %v5369_v12 = vpop.f32.mrb[11].mxu1  ;;  %v1773_v21 = vmul.f32 %v5367_v8, %v5367_v8  ;;  %v5443_v1 = vpack.c.bf16 %v2257_v0, %v2256_v63 }
 0x46e   : > { %v1772_v34 = vmul.f32 %v5369_v12, %v5369_v12 }
 0x46f   : > { %1792 = vadd.xlane.f32.xlu1 %v1769_v4  ;;  %v2259_v4 = vld [vmem:[%s5031_s30 + $0x68] sm:$0xff]  ;;  %3990 = vmatprep.subr.bf16.mxu0 %v5443_v1 }
 0x470   : > { %1852 = vadd.xlane.f32.xlu0 %v1823_v15  ;;  %v5375_v18 = vpop.f32.mrb[12].mxu1  ;;  %v5451_v7 = vpack.c.bf16 %v2259_v4, %v2258_v3  ;;  %3992 = vmatpush3.bf16.msra.mxu0 %v5443_v1  ;;  %v5455_v15 = vpop.xlane.xlu0 %1834 }
 0x471   : > { %v5379_v22 = vpop.f32.mrb[13].mxu1  ;;  %v1775_v35 = vmul.f32 %v5375_v18, %v5375_v18  ;;  %vm1888_vm9 = vcmp.eq.f32.partialorder %v5455_v15, inf  ;;  %vm1890_vm11 = vcmp.eq.f32.partialorder %v5455_v15, 0.0 }
 0x472   : > { %v1774_v36 = vmul.f32 %v5379_v22, %v5379_v22  ;;  %3994 = vmatprep.subr.bf16.mxu0 %v5451_v7 }
 0x473   : > { %1790 = vadd.xlane.f32.xlu1 %v1768_v16  ;;  %v4231_v16 = vpop.eup %4230 }
 0x474   : > { %1854 = vadd.xlane.f32.xlu0 %v1824_v17  ;;  %v5387_v25 = vpop.f32.mrb[14].mxu1  ;;  %3996 = vmatpush3.bf16.msra.mxu0 %v5451_v7  ;;  %v5458_v9 = vpop.xlane.xlu0 %1836  ;;  %v1866_v26 = vmul.f32 %v4231_v16, %v1829_v14 }
 0x475   : > { %v5389_v27 = vpop.f32.mrb[15].mxu1  ;;  %v1777_v31 = vmul.f32 %v5387_v25, %v5387_v25  ;;  %4238 = vrsqrt.f32 %v5458_v9  ;;  %vm1895_vm8 = vcmp.eq.f32.partialorder %v5458_v9, inf  ;;  %vm1897_vm10 = vcmp.eq.f32.partialorder %v5458_v9, 0.0 }
 0x476   : > { %v1776_v37 = vmul.f32 %v5389_v27, %v5389_v27 }
 0x477   : > { %1796 = vadd.xlane.f32.xlu1 %v1771_v23  ;;  %v4233_v23 = vpop.eup %4232 }
 0x478   : > { %1856 = vadd.xlane.f32.xlu0 %v1825_v20  ;;  %v5460_v13 = vpop.xlane.xlu0 %1838  ;;  %v1859_v29 = vmul.f32 %v4233_v23, %v5425_v52  ;;  %v4235_v32 = vpop.eup %4234 }
 0x479   : > { %v4237_v38 = vpop.eup %4236  ;;  %v1880_v39 = vmul.f32 %v4235_v32, %v5447_v5  ;;  %vm1902_vm13 = vcmp.eq.f32.partialorder %v5460_v13, inf  ;;  %vm1904_vm15 = vcmp.eq.f32.partialorder %v5460_v13, 0.0 }
 0x47a   : > { %v1873_v57 = vmul.f32 %v4237_v38, %v5437_v10 }
 0x47b   : > { %1794 = vadd.xlane.f32.xlu1 %v1770_v33  ;;  %v1870_v33 = vand.u32 2147483648, %v1829_v14  ;;  %v1882_v63 = vsel %vm1881_vm4, %v5447_v5, %v1880_v39 }
 0x47c   : > { %1808 = vadd.xlane.f32.xlu0 %v1777_v31  ;;  %v5462_v17 = vpop.xlane.xlu0 %1840 }
 0x47d   : > { %vm1909_vm12 = vcmp.eq.f32.partialorder %v5462_v17, inf  ;;  %vm1911_vm14 = vcmp.eq.f32.partialorder %v5462_v17, 0.0 }
 0x47f   : > { %1800 = vadd.xlane.f32.xlu1 %v1773_v21  ;;  %v4239_v6 = vpop.eup %4238 }
 0x480   : > { %v5466_v19 = vpop.xlane.xlu0 %1842  ;;  %v1894_v32 = vmul.f32 %v4239_v6, %v5458_v9 }
 0x483   : > { %1798 = vadd.xlane.f32.xlu1 %v1772_v34 }
 0x487   : > { %1804 = vadd.xlane.f32.xlu1 %v1775_v35  ;;  %v1863_v35 = vand.u32 2147483648, %v5425_v52 }
 0x48b   : > { %1802 = vadd.xlane.f32.xlu1 %v1774_v36  ;;  %v1868_v36 = vsel %vm1867_vm0, %v1829_v14, %v1866_v26 }
 0x48c   : > { %v1871_v42 = vsel %vm1869_vm2, %v1870_v33, %v1868_v36 }
 0x48d   : > { %v1974_v0 = vmul.f32 %v5482_v49, %v1871_v42 }
 0x48f   : > { %1806 = vadd.xlane.f32.xlu1 %v1776_v37  ;;  %v1861_v37 = vsel %vm1860_vm1, %v5425_v52, %v1859_v29  ;;  %v1884_v52 = vand.u32 2147483648, %v5447_v5  ;;  %vm1916_vm1 = vcmp.eq.f32.partialorder %v5466_v19, inf }
 0x490   : > { %v1864_v53 = vsel %vm1862_vm3, %v1863_v35, %v1861_v37  ;;  %vm1918_vm3 = vcmp.eq.f32.partialorder %v5466_v19, 0.0 }
 0x491   : > { %v1973_v23 = vmul.f32 %v5482_v49, %v1864_v53  ;;  %v1896_v53 = vsel %vm1895_vm8, %v5458_v9, %v1894_v32 }
 0x4e8   : > { %v1781_v24 = vpop.xlane.xlu1 %1780 }
 0x4e9   : > { %v1990_v60 = vmax.f32 %v1781_v24, 1e-24  ;;  %v1779_v20 = vpop.xlane.xlu0 %1778 }
 0x4ea   : > { %v1989_v28 = vmax.f32 %v1779_v20, 1e-24 }
 0x4eb   : > { %4240 = vrsqrt.f32 %v1990_v60  ;;  %v1877_v60 = vand.u32 2147483648, %v5437_v10 }
 0x4ec   : > { %4242 = vrsqrt.f32 %v1989_v28  ;;  %v1785_v31 = vpop.xlane.xlu1 %1784  ;;  %v1875_v28 = vsel %vm1874_vm5, %v5437_v10, %v1873_v57  ;;  %v4296_v57 = vld [vmem:[#allocation2 + $0x8] sm:$0xff] }
 0x4ed   : > { %4244 = vrsqrt.f32 %v5455_v15  ;;  %v1992_v21 = vmax.f32 %v1785_v31, 1e-24  ;;  %v5473_v34 = vpop.xlane.xlu0 %1844  ;;  %v1885_v31 = vsel %vm1883_vm6, %v1884_v52, %v1882_v63  ;;  %v1878_v5 = vsel %vm1876_vm7, %v1877_v60, %v1875_v28 }
 0x4ee   : > { %vm1923_vm0 = vcmp.eq.f32.partialorder %v5473_v34, inf  ;;  %vm1925_vm2 = vcmp.eq.f32.partialorder %v5473_v34, 0.0 }
 0x4ef   : > { %4246 = vrsqrt.f32 %v1992_v21 }
 0x4f0   : > { %v1783_v40 = vpop.xlane.xlu1 %1782  ;;  %4248 = vrsqrt.f32 %v5462_v17 }
 0x4f1   : > { %v1991_v44 = vmax.f32 %v1783_v40, 1e-24  ;;  %v5480_v46 = vpop.xlane.xlu0 %1846  ;;  %v1976_v40 = vmul.f32 %v5482_v49, %v1885_v31 }
 0x4f2   : > { %vm1930_vm5 = vcmp.eq.f32.partialorder %v5480_v46, inf  ;;  %vm1932_vm7 = vcmp.eq.f32.partialorder %v5480_v46, 0.0 }
 0x4f3   : > { %4250 = vrsqrt.f32 %v1991_v44 }
 0x4f4   : > { %v1789_v3 = vpop.xlane.xlu1 %1788  ;;  %4252 = vrsqrt.f32 %v5460_v13 }
 0x4f5   : > { %v4241_v4 = vpop.eup %4240  ;;  %v1994_v14 = vmax.f32 %v1789_v3, 1e-24  ;;  %v5492_v16 = vpop.xlane.xlu0 %1848  ;;  %v1975_v3 = vmul.f32 %v5482_v49, %v1878_v5  ;;  %v4298_v5 = vld [vmem:[#allocation2 + $0x18] sm:$0xff] }
 0x4f6   : > { %v4243_v24 = vpop.eup %4242  ;;  %v2022_v20 = vmul.f32 %v4241_v4, %v1974_v0  ;;  %v1891_v4 = vand.u32 2147483648, %v5455_v15  ;;  %vm1937_vm4 = vcmp.eq.f32.partialorder %v5492_v16, inf  ;;  %vm1939_vm6 = vcmp.eq.f32.partialorder %v5492_v16, 0.0 }
 0x4f7   : > { %v4245_v26 = vpop.eup %4244  ;;  %4254 = vrsqrt.f32 %v1994_v14  ;;  %v2021_v29 = vmul.f32 %v4243_v24, %v1973_v23 }
 0x4f8   : > { %v1787_v33 = vpop.xlane.xlu1 %1786  ;;  %v2038_v21 = vmul.f32 %v5319_v30, %v2022_v20  ;;  %4256 = vrsqrt.f32 %v5466_v19  ;;  %v1887_v39 = vmul.f32 %v4245_v26, %v5455_v15  ;;  %v1898_v30 = vand.u32 2147483648, %v5458_v9 }
 0x4f9   : > { %v4247_v35 = vpop.eup %4246  ;;  %v1993_v36 = vmax.f32 %v1787_v33, 1e-24  ;;  %v5504_v37 = vpop.xlane.xlu0 %1850  ;;  %v2037_v38 = vmul.f32 %v2021_v29, %v5321_v47  ;;  %4258 = vrsqrt.f32 %v5473_v34  ;;  %v1912_v29 = vand.u32 2147483648, %v5462_v17 }
 0x4fa   : > { %v4249_v44 = vpop.eup %4248  ;;  %v2054_v52 = vadd.f32 %v4296_v57, %v2038_v21  ;;  %v2024_v6 = vmul.f32 %v4247_v35, %v1976_v40  ;;  %v1899_v60 = vsel %vm1897_vm10, %v1898_v30, %v1896_v53  ;;  %vm1944_vm8 = vcmp.eq.f32.partialorder %v5504_v37, inf }
 0x4fb   : > { %4260 = vrsqrt.f32 %v1993_v36  ;;  %v2053_v42 = vadd.f32 %v2037_v38, %v5150_v51  ;;  %v1889_v51 = vsel %vm1888_vm9, %v5455_v15, %v1887_v39  ;;  %v1908_v23 = vmul.f32 %v4249_v44, %v5462_v17  ;;  %v4297_v36 = vld [vmem:[#allocation2 + $0x10] sm:$0xff] }
 0x4fc   : > { %v1793_v47 = vpop.xlane.xlu1 %1792  ;;  %v2040_v26 = vmul.f32 %v5327_v50, %v2024_v6  ;;  %v1978_v33 = vmul.f32 %v5482_v49, %v1899_v60 }
 0x4fd   : > { %v4251_v10 = vpop.eup %4250  ;;  %v1996_v63 = vmax.f32 %v1793_v47, 1e-24  ;;  %3624 = vmatprep.mubr.f32.mxu1 %v2053_v42  ;;  %v5517_v0 = vpop.xlane.xlu0 %1852  ;;  %v1910_v21 = vsel %vm1909_vm12, %v5462_v17, %v1908_v23  ;;  %v1905_v42 = vand.u32 2147483648, %v5460_v13  ;;  %v1926_v23 = vand.u32 2147483648, %v5473_v34 }
 0x4fe   : > { %3625 = vmatmul.mubr.f32.vlgmr.msra.gmra.mrb[16].mxu1 %v2054_v52  ;;  %v4253_v14 = vpop.eup %4252  ;;  %v2023_v24 = vmul.f32 %v4251_v10, %v1975_v3  ;;  %v2056_v40 = vadd.f32 %v4298_v5, %v2040_v26  ;;  %v1913_v47 = vsel %vm1911_vm14, %v1912_v29, %v1910_v21  ;;  %vm1951_vm9 = vcmp.eq.f32.partialorder %v5517_v0, inf }
 0x4ff   : > { %4262 = vrsqrt.f32 %v1996_v63  ;;  %4097 = vmatpush3.bf16.msra.mxu1 %v5410_v41  ;;  %v1901_v9 = vmul.f32 %v4253_v14, %v5460_v13  ;;  %v1892_v41 = vsel %vm1890_vm11, %v1891_v4, %v1889_v51  ;;  %vm1953_vm10 = vcmp.eq.f32.partialorder %v5517_v0, 0.0 }
 0x500   : > { %v1791_v20 = vpop.xlane.xlu1 %1790  ;;  %4090 = vmatprep.subr.bf16.mxu1 %v5413_v43  ;;  %v2039_v32 = vmul.f32 %v2023_v24, %v5331_v56  ;;  %4264 = vrsqrt.f32 %v5492_v16  ;;  %v1977_v53 = vmul.f32 %v5482_v49, %v1892_v41  ;;  %v4299_v24 = vld [vmem:[#allocation2 + $0x20] sm:$0xff]  ;;  %vm1946_vm12 = vcmp.eq.f32.partialorder %v5504_v37, 0.0 }
 0x501   : > { %v4255_v28 = vpop.eup %4254  ;;  %v1995_v31 = vmax.f32 %v1791_v20, 1e-24  ;;  %v5542_v35 = vpop.xlane.xlu0 %1854 }
 0x502   : > { %v4257_v50 = vpop.eup %4256  ;;  %v2055_v38 = vadd.f32 %v4297_v36, %v2039_v32  ;;  %v2026_v15 = vmul.f32 %v4255_v28, %v1978_v33  ;;  %v4300_v28 = vld [vmem:[#allocation2 + $0x28] sm:$0xff]  ;;  %vm1958_vm14 = vcmp.eq.f32.partialorder %v5542_v35, inf }
 0x503   : > { %4266 = vrsqrt.f32 %v1995_v31  ;;  %4098 = vmatpush3.bf16.msra.mxu1 %v5413_v43  ;;  %v4259_v56 = vpop.eup %4258  ;;  %v1903_v43 = vsel %vm1902_vm13, %v5460_v13, %v1901_v9  ;;  %v1915_v6 = vmul.f32 %v4257_v50, %v5466_v19  ;;  %v1919_v13 = vand.u32 2147483648, %v5466_v19 }
 0x504   : > { %v1797_v39 = vpop.xlane.xlu1 %1796  ;;  %4091 = vmatprep.subr.bf16.mxu1 %v5421_v48  ;;  %4268 = vrsqrt.f32 %v5480_v46  ;;  %3627 = vmatprep.mubr.f32.mxu1 %v2055_v38  ;;  %v1922_v57 = vmul.f32 %v4259_v56, %v5473_v34  ;;  %v2042_v63 = vmul.f32 %v5335_v54, %v2026_v15  ;;  %v1906_v14 = vsel %vm1904_vm15, %v1905_v42, %v1903_v43  ;;  %v4302_v42 = vld [vmem:[#allocation2 + $0x38] sm:$0xff] }
 0x505   : > { %v4261_v30 = vpop.eup %4260  ;;  %v1998_v44 = vmax.f32 %v1797_v39, 1e-24  ;;  %3628 = vmatmul.mubr.f32.gmra.mrb[18].mxu1 %v2056_v40  ;;  %v5561_v51 = vpop.xlane.xlu0 %1856  ;;  %v1979_v31 = vmul.f32 %v5482_v49, %v1906_v14  ;;  %v1917_v9 = vsel %vm1916_vm1, %v5466_v19, %v1915_v6  ;;  %v4301_v40 = vld [vmem:[#allocation2 + $0x30] sm:$0xff]  ;;  %v1933_v6 = vand.u32 2147483648, %v5480_v46 }
 0x506   : > { %v2025_v52 = vmul.f32 %v4261_v30, %v1977_v53  ;;  %v1924_v54 = vsel %vm1923_vm0, %v5473_v34, %v1922_v57  ;;  %v2058_v29 = vadd.f32 %v4300_v28, %v2042_v63  ;;  %v1920_v56 = vsel %vm1918_vm3, %v1919_v13, %v1917_v9 }
 0x507   : > { %4270 = vrsqrt.f32 %v1998_v44  ;;  %4099 = vmatpush3.bf16.msra.mxu1 %v5421_v48  ;;  %v1980_v48 = vmul.f32 %v5482_v49, %v1913_v47  ;;  %v1927_v33 = vsel %vm1925_vm2, %v1926_v23, %v1924_v54  ;;  %v1981_v57 = vmul.f32 %v5482_v49, %v1920_v56 }
 0x508   : > { %v1795_v10 = vpop.xlane.xlu1 %1794  ;;  %4092 = vmatprep.subr.bf16.mxu1 %v5429_v55  ;;  %v2041_v4 = vmul.f32 %v2025_v52, %v5341_v58  ;;  %4272 = vrsqrt.f32 %v5517_v0  ;;  %v1982_v5 = vmul.f32 %v5482_v49, %v1927_v33  ;;  %v1954_v54 = vand.u32 2147483648, %v5517_v0 }
 0x509   : > { %v4263_v3 = vpop.eup %4262  ;;  %v1997_v17 = vmax.f32 %v1795_v10, 1e-24  ;;  %v1809_v30 = vpop.xlane.xlu0 %1808  ;;  %vm1965_vm11 = vcmp.eq.f32.partialorder %v5561_v51, inf  ;;  %vm1967_vm13 = vcmp.eq.f32.partialorder %v5561_v51, 0.0  ;;  %vm1960_vm15 = vcmp.eq.f32.partialorder %v5542_v35, 0.0 }
 0x50a   : > { %v2057_v60 = vadd.f32 %v4299_v24, %v2041_v4  ;;  %v2028_v20 = vmul.f32 %v4263_v3, %v1980_v48  ;;  %v4265_v58 = vpop.eup %4264 }
 0x50b   : > { %4274 = vrsqrt.f32 %v1997_v17  ;;  %4100 = vmatpush3.bf16.msra.mxu1 %v5429_v55  ;;  %v1936_v21 = vmul.f32 %v4265_v58, %v5492_v16 }
 0x50c   : > { %4276 = vrsqrt.f32 %v5561_v51  ;;  %v1801_v26 = vpop.xlane.xlu1 %1800  ;;  %4093 = vmatprep.subr.bf16.mxu1 %v5435_v59  ;;  %3630 = vmatprep.mubr.f32.mxu1 %v2057_v60  ;;  %v2044_v36 = vmul.f32 %v5347_v61, %v2028_v20 }
 0x50d   : > { %v4267_v32 = vpop.eup %4266  ;;  %4278 = vrsqrt.f32 %v5504_v37  ;;  %v2000_v55 = vmax.f32 %v1801_v26, 1e-24  ;;  %3631 = vmatmul.mubr.f32.gmra.mrb[20].mxu1 %v2058_v29  ;;  %v4303_v26 = vld [vmem:[#allocation2 + $0x40] sm:$0xff] }
 0x50e   : > { %v2027_v41 = vmul.f32 %v4267_v32, %v1979_v31  ;;  %v4269_v50 = vpop.eup %4268  ;;  %v2060_v44 = vadd.f32 %v4302_v42, %v2044_v36  ;;  %v4304_v31 = vld [vmem:[#allocation2 + $0x48] sm:$0xff]  ;;  %v4306_v42 = vld [vmem:[#allocation2 + $0x58] sm:$0xff] }
 0x50f   : > { %4280 = vrsqrt.f32 %v2000_v55  ;;  %4101 = vmatpush3.bf16.msra.mxu1 %v5435_v59  ;;  %v1929_v61 = vmul.f32 %v4269_v50, %v5480_v46  ;;  %v1940_v59 = vand.u32 2147483648, %v5492_v16  ;;  %v1947_v50 = vand.u32 2147483648, %v5504_v37 }
 0x510   : > { %v1799_v19 = vpop.xlane.xlu1 %1798  ;;  %v2043_v38 = vmul.f32 %v2027_v41, %v5349_v62  ;;  %4094 = vmatprep.subr.bf16.mxu1 %v5443_v1  ;;  %4282 = vrsqrt.f32 %v5542_v35  ;;  %v1938_v62 = vsel %vm1937_vm4, %v5492_v16, %v1936_v21 }
 0x511   : > { %v4271_v39 = vpop.eup %4270  ;;  %v1999_v34 = vmax.f32 %v1799_v19, 1e-24  ;;  %v1931_v3 = vsel %vm1930_vm5, %v5480_v46, %v1929_v61  ;;  %v1941_v4 = vsel %vm1939_vm6, %v1940_v59, %v1938_v62  ;;  %v1968_v46 = vand.u32 2147483648, %v5561_v51 }
 0x512   : > { %v2059_v15 = vadd.f32 %v4301_v40, %v2043_v38  ;;  %v2030_v53 = vmul.f32 %v4271_v39, %v1982_v5  ;;  %v4273_v43 = vpop.eup %4272  ;;  %v1934_v13 = vsel %vm1932_vm7, %v1933_v6, %v1931_v3  ;;  %v1961_v59 = vand.u32 2147483648, %v5542_v35  ;;  %v4307_v3 = vld [vmem:[#allocation2 + $0x60] sm:$0xff] }
 0x513   : > { %4284 = vrsqrt.f32 %v1999_v34  ;;  %4102 = vmatpush3.bf16.msra.mxu1 %v5443_v1  ;;  %v2004_v1 = vmax.f32 %v1809_v30, 1e-24  ;;  %v1950_v48 = vmul.f32 %v4273_v43, %v5517_v0  ;;  %v1983_v41 = vmul.f32 %v5482_v49, %v1934_v13 }
 0x514   : > { %3633 = vmatprep.mubr.f32.mxu1 %v2059_v15  ;;  %v1805_v47 = vpop.xlane.xlu1 %1804  ;;  %4095 = vmatprep.subr.bf16.mxu1 %v5451_v7  ;;  %v2046_v23 = vmul.f32 %v5355_v2, %v2030_v53  ;;  %v1984_v2 = vmul.f32 %v5482_v49, %v1941_v4  ;;  %v4308_v4 = vld [vmem:[#allocation2 + $0x68] sm:$0xff] }
 0x515   : > { %v4275_v52 = vpop.eup %4274  ;;  %v2002_v10 = vmax.f32 %v1805_v47, 1e-24  ;;  %3634 = vmatmul.mubr.f32.gmra.mrb[22].mxu1 %v2060_v44 }
 0x516   : > { %v4277_v63 = vpop.eup %4276  ;;  %v2029_v17 = vmul.f32 %v4275_v52, %v1981_v57  ;;  %v2062_v32 = vadd.f32 %v4304_v31, %v2046_v23 }
 0x517   : > { %v4279_v14 = vpop.eup %4278  ;;  %4286 = vrsqrt.f32 %v2002_v10  ;;  %4103 = vmatpush3.bf16.msra.mxu1 %v5451_v7  ;;  %v1964_v20 = vmul.f32 %v4277_v63, %v5561_v51 }
 0x518   : > { %v1803_v24 = vpop.xlane.xlu1 %1802  ;;  %v2045_v16 = vmul.f32 %v2029_v17, %v5359_v11  ;;  %v1943_v7 = vmul.f32 %v4279_v14, %v5504_v37  ;;  %4288 = vrsqrt.f32 %v2004_v1  ;;  %v1952_v11 = vsel %vm1951_vm9, %v5517_v0, %v1950_v48  ;;  %v4305_v0 = vld [vmem:[#allocation2 + $0x50] sm:$0xff] }
 0x519   : > { %v4281_v60 = vpop.eup %4280  ;;  %v2001_v58 = vmax.f32 %v1803_v24, 1e-24  ;;  %v1966_v21 = vsel %vm1965_vm11, %v5561_v51, %v1964_v20  ;;  %v1955_v39 = vsel %vm1953_vm10, %v1954_v54, %v1952_v11  ;;  %v4310_v24 = vld [vmem:[#allocation2 + $0x78] sm:$0xff] }
 0x51a   : > { %v2061_v28 = vadd.f32 %v4303_v26, %v2045_v16  ;;  %v4283_v29 = vpop.eup %4282  ;;  %v2032_v9 = vmul.f32 %v4281_v60, %v1984_v2  ;;  %v1945_v19 = vsel %vm1944_vm8, %v5504_v37, %v1943_v7  ;;  %v1969_v51 = vsel %vm1967_vm13, %v1968_v46, %v1966_v21  ;;  %v2261_v16 = vld [vmem:[%s5031_s30 + $0x78] sm:$0xff] }
 0x51b   : > { %4290 = vrsqrt.f32 %v2001_v58  ;;  %v1957_v38 = vmul.f32 %v4283_v29, %v5542_v35  ;;  %v1948_v40 = vsel %vm1946_vm12, %v1947_v50, %v1945_v19  ;;  %v1986_v15 = vmul.f32 %v5482_v49, %v1955_v39 }
 0x51c   : > { %3636 = vmatprep.mubr.f32.mxu1 %v2061_v28  ;;  %v1807_v55 = vpop.xlane.xlu1 %1806  ;;  %v2048_v34 = vmul.f32 %v5367_v8, %v2032_v9  ;;  %v1985_v43 = vmul.f32 %v5482_v49, %v1948_v40 }
 0x51d   : > { %v4285_v33 = vpop.eup %4284  ;;  %v2003_v36 = vmax.f32 %v1807_v55, 1e-24  ;;  %3637 = vmatmul.mubr.f32.gmra.mrb[24].mxu1 %v2062_v32  ;;  %v1959_v62 = vsel %vm1958_vm14, %v5542_v35, %v1957_v38 }
 0x51e   : > { %v2031_v56 = vmul.f32 %v4285_v33, %v1983_v41  ;;  %v2064_v44 = vadd.f32 %v4306_v42, %v2048_v34  ;;  %v1962_v37 = vsel %vm1960_vm15, %v1961_v59, %v1959_v62  ;;  %v2407_v62 = vld [vmem:[%s835_s1] sm:$0x1] }
 0x51f   : > { %4292 = vrsqrt.f32 %v2003_v36  ;;  %v1987_v10 = vmul.f32 %v5482_v49, %v1962_v37 }
 0x520   : > { %v2047_v5 = vmul.f32 %v2031_v56, %v5369_v12  ;;  %v1988_v12 = vmul.f32 %v5482_v49, %v1969_v51  ;;  %v2260_v49 = vld [vmem:[%s5031_s30 + $0x70] sm:$0xff] }
 0x521   : > { %v4287_v61 = vpop.eup %4286  ;;  %v3997_v60 = vpack.c.bf16 %v2261_v16, %v2260_v49 }
 0x522   : > { %v2063_v30 = vadd.f32 %v4305_v0, %v2047_v5  ;;  %v2034_v8 = vmul.f32 %v4287_v61, %v1986_v15  ;;  %v4289_v53 = vpop.eup %4288  ;;  %v2408_v0 = vadd.f32 1e-05, %v2407_v62 }
 0x523   : > { %v2036_v6 = vmul.f32 %v4289_v53, %v1988_v12  ;;  %3998 = vmatprep.subr.bf16.mxu0 %v3997_v60  ;;  %4096 = vmatprep.subr.bf16.mxu1 %v3997_v60 }
 0x524   : > { %3639 = vmatprep.mubr.f32.mxu1 %v2063_v30  ;;  %v2050_v52 = vmul.f32 %v5375_v18, %v2034_v8  ;;  %v4309_v18 = vld [vmem:[#allocation2 + $0x70] sm:$0xff]  ;;  %4000 = vmatpush3.bf16.msra.mxu0 %v3997_v60  ;;  %4294 = vrsqrt.f32 %v2408_v0  ;;  %v2436_v30 = vsub.s32 0, %v5214_v45 }
 0x525   : > { %v4291_v47 = vpop.eup %4290  ;;  %3640 = vmatmul.mubr.f32.gmra.mrb[26].mxu1 %v2064_v44  ;;  %v2052_v48 = vmul.f32 %v5387_v25, %v2036_v6  ;;  %v5667_v44 = vld [vmem:[%s832_s4] ss:$0 sm:$0xff] }
 0x526   : > { %v2033_v57 = vmul.f32 %v4291_v47, %v1985_v43  ;;  %v2066_v14 = vadd.f32 %v4308_v4, %v2050_v52  ;;  %4104 = vmatpush3.bf16.msra.mxu1 %v3997_v60  ;;  %v5677_v47 = vld [vmem:[%s826_s28] ss:$0 sm:$0xff] }
 0x527   : > { %v5686_v52 = vld [vmem:[%s829_s20] ss:$0 sm:$0xff]  ;;  %s5989_s20 = sld [smem:[#allocation27_spill]] (!%p3112_p13) }
 0x528   : > { %v2049_v35 = vmul.f32 %v2033_v57, %v5379_v22  ;;  %v2068_v22 = vadd.f32 %v4310_v24, %v2052_v48 }
 0x529   : > { %v4293_v63 = vpop.eup %4292 }
 0x52a   : > { %v2065_v1 = vadd.f32 %v4307_v3, %v2049_v35  ;;  %v2035_v17 = vmul.f32 %v4293_v63, %v1987_v10 }
 0x52c   : > { %3642 = vmatprep.mubr.f32.mxu1 %v2065_v1  ;;  %v2051_v23 = vmul.f32 %v2035_v17, %v5389_v27 }
 0x52d   : > { %3643 = vmatmul.mubr.f32.gmra.mrb[28].mxu1 %v2066_v14 }
 0x52e   : > { %v2067_v54 = vadd.f32 %v4309_v18, %v2051_v23  ;;  %v4295_v42 = vpop.eup %4294 }
 0x52f   : > { %v5669_v8 = vrot.slane %v4295_v42, %v2436_v30 }
 0x530   : > { %3645 = vmatprep.mubr.f32.mxu1 %v2067_v54 }
 0x531   : > { %3646 = vmatmul.mubr.f32.gmra.mrb[30].mxu1 %v2068_v22 }
 0x5d1   : > { %v3626_v20 = vpop.f32.mrb[16].mxu1 }
 0x5d2   : > { %v2151_v58 = vpop.f32.mrb[17].mxu1  ;;  %v2231_v13 = vmax.f32 %v3626_v20, 0.0 }
 0x5d3   : > { %v2230_v25 = vmax.f32 %v2151_v58, 0.0 }
 0x5d5   : > { %3680 = vmatprep.mubr.f32.mxu0 %v2230_v25 }
 0x5d6   : > { %3681 = vmatmul.mubr.f32.vlgmr.msra.gmra.mrb[16].mxu0 %v2231_v13 }
 0x5d8   : > { %v3629_v27 = vpop.f32.mrb[18].mxu1 }
 0x5d9   : > { %v2161_v2 = vpop.f32.mrb[19].mxu1  ;;  %v2233_v26 = vmax.f32 %v3629_v27, 0.0 }
 0x5da   : > { %v2232_v7 = vmax.f32 %v2161_v2, 0.0 }
 0x5dc   : > { %3683 = vmatprep.mubr.f32.mxu0 %v2232_v7 }
 0x5dd   : > { %3684 = vmatmul.mubr.f32.gmra.mrb[18].mxu0 %v2233_v26 }
 0x5e0   : > { %v3632_v28 = vpop.f32.mrb[20].mxu1 }
 0x5e1   : > { %v2171_v29 = vpop.f32.mrb[21].mxu1  ;;  %v2235_v31 = vmax.f32 %v3632_v28, 0.0 }
 0x5e2   : > { %v2234_v11 = vmax.f32 %v2171_v29, 0.0 }
 0x5e4   : > { %3686 = vmatprep.mubr.f32.mxu0 %v2234_v11 }
 0x5e5   : > { %3687 = vmatmul.mubr.f32.gmra.mrb[20].mxu0 %v2235_v31 }
 0x5e8   : > { %v3635_v32 = vpop.f32.mrb[22].mxu1 }
 0x5e9   : > { %v2181_v9 = vpop.f32.mrb[23].mxu1  ;;  %v2237_v55 = vmax.f32 %v3635_v32, 0.0 }
 0x5ea   : > { %v2236_v46 = vmax.f32 %v2181_v9, 0.0 }
 0x5ec   : > { %3689 = vmatprep.mubr.f32.mxu0 %v2236_v46 }
 0x5ed   : > { %3690 = vmatmul.mubr.f32.gmra.mrb[22].mxu0 %v2237_v55 }
 0x5f0   : > { %v3638_v41 = vpop.f32.mrb[24].mxu1 }
 0x5f1   : > { %v2191_v33 = vpop.f32.mrb[25].mxu1  ;;  %v2239_v21 = vmax.f32 %v3638_v41, 0.0 }
 0x5f2   : > { %v2238_v50 = vmax.f32 %v2191_v33, 0.0 }
 0x5f4   : > { %3692 = vmatprep.mubr.f32.mxu1 %v2238_v50 }
 0x5f5   : > { %3693 = vmatmul.mubr.f32.vlgmr.msra.gmra.mrb[32].mxu1 %v2239_v21 }
 0x5f8   : > { %v3641_v36 = vpop.f32.mrb[26].mxu1 }
 0x5f9   : > { %v2201_v19 = vpop.f32.mrb[27].mxu1  ;;  %v2241_v56 = vmax.f32 %v3641_v36, 0.0 }
 0x5fa   : > { %v2240_v38 = vmax.f32 %v2201_v19, 0.0 }
 0x5fc   : > { %3695 = vmatprep.mubr.f32.mxu1 %v2240_v38 }
 0x5fd   : > { %3696 = vmatmul.mubr.f32.gmra.mrb[34].mxu1 %v2241_v56 }
 0x600   : > { %v3644_v39 = vpop.f32.mrb[28].mxu1 }
 0x601   : > { %v2211_v34 = vpop.f32.mrb[29].mxu1  ;;  %v2243_v51 = vmax.f32 %v3644_v39, 0.0 }
 0x602   : > { %v2242_v5 = vmax.f32 %v2211_v34, 0.0 }
 0x604   : > { %v3647_v61 = vpop.f32.mrb[30].mxu1  ;;  %3698 = vmatprep.mubr.f32.mxu1 %v2242_v5 }
 0x605   : > { %v2221_v59 = vpop.f32.mrb[31].mxu1  ;;  %3699 = vmatmul.mubr.f32.gmra.mrb[36].mxu1 %v2243_v51  ;;  %v2245_v15 = vmax.f32 %v3647_v61, 0.0 }
 0x606   : > { %v2244_v40 = vmax.f32 %v2221_v59, 0.0 }
 0x608   : > { %3701 = vmatprep.mubr.f32.mxu1 %v2244_v40 }
 0x609   : > { %3702 = vmatmul.mubr.f32.gmra.mrb[38].mxu1 %v2245_v15 }
 0x6a9   : > { %v3682_v12 = vpop.f32.mrb[16].mxu0 }
 0x6aa   : > { %v2418_v53 = vsub.f32 %v3682_v12, %v5667_v44  ;;  %v2328_v43 = vpop.f32.mrb[17].mxu0 }
 0x6ab   : > { %v2417_v37 = vsub.f32 %v2328_v43, %v5667_v44 }
 0x6ac   : > { %v2440_v57 = vmul.f32 %v5669_v8, %v2418_v53 }
 0x6ad   : > { %v2439_v6 = vmul.f32 %v5669_v8, %v2417_v37 }
 0x6ae   : > { %v2463_v35 = vmul.f32 %v5677_v47, %v2440_v57 }
 0x6af   : > { %v2462_v10 = vmul.f32 %v5677_v47, %v2439_v6 }
 0x6b0   : > { %v2486_v63 = vadd.f32 %v5686_v52, %v2463_v35  ;;  %v3685_v1 = vpop.f32.mrb[18].mxu0 }
 0x6b1   : > { %v2485_v3 = vadd.f32 %v5686_v52, %v2462_v10  ;;  %v2420_v4 = vsub.f32 %v3685_v1, %v5667_v44  ;;  %v2338_v14 = vpop.f32.mrb[19].mxu0 }
 0x6b2   : > { %vm2502_vm0 = vcmp.gt.f32.partialorder %v2486_v63, 0.0  ;;  %v2518_v17 = vmul.f32 0.01, %v2486_v63  ;;  %v2419_v23 = vsub.f32 %v2338_v14, %v5667_v44 }
 0x6b3   : > { %vm2501_vm1 = vcmp.gt.f32.partialorder %v2485_v3, 0.0  ;;  %v2517_v48 = vmul.f32 0.01, %v2485_v3  ;;  %v2442_v54 = vmul.f32 %v5669_v8, %v2420_v4 }
 0x6b4   : > { %v5695_v18 = vsel %vm2502_vm0, %v2486_v63, %v2518_v17  ;;  %v2441_v22 = vmul.f32 %v5669_v8, %v2419_v23  ;;  %vm4603_vm0 = vmmov (!%p3112_p13), 0  }
 0x6b5   : > { %2550 = vst [vmem:[#allocation2 + $0x8] sm:$0xff] %v5695_v18  ;;  %v5699_v24 = vsel %vm2501_vm1, %v2485_v3, %v2517_v48  ;;  %v2465_v49 = vmul.f32 %v5677_v47, %v2442_v54 }
 0x6b6   : > { %2549 = vst [vmem:[#allocation2] sm:$0xff] %v5699_v24  ;;  %v2464_v16 = vmul.f32 %v5677_v47, %v2441_v22 }
 0x6b7   : > { %v2488_v60 = vadd.f32 %v5686_v52, %v2465_v49 }
 0x6b8   : > { %v2487_v20 = vadd.f32 %v5686_v52, %v2464_v16  ;;  %v3688_v58 = vpop.f32.mrb[20].mxu0 }
 0x6b9   : > { %vm2504_vm2 = vcmp.gt.f32.partialorder %v2488_v60, 0.0  ;;  %v2520_v25 = vmul.f32 0.01, %v2488_v60  ;;  %v2422_v13 = vsub.f32 %v3688_v58, %v5667_v44  ;;  %v2348_v27 = vpop.f32.mrb[21].mxu0 }
 0x6ba   : > { %vm2503_vm3 = vcmp.gt.f32.partialorder %v2487_v20, 0.0  ;;  %v2519_v2 = vmul.f32 0.01, %v2487_v20  ;;  %v2421_v7 = vsub.f32 %v2348_v27, %v5667_v44 }
 0x6bb   : > { %v5709_v26 = vsel %vm2504_vm2, %v2488_v60, %v2520_v25  ;;  %v2444_v28 = vmul.f32 %v5669_v8, %v2422_v13 }
 0x6bc   : > { %2552 = vst [vmem:[#allocation2 + $0x18] sm:$0xff] %v5709_v26  ;;  %v5713_v29 = vsel %vm2503_vm3, %v2487_v20, %v2519_v2  ;;  %v2443_v11 = vmul.f32 %v5669_v8, %v2421_v7 }
 0x6bd   : > { %2551 = vst [vmem:[#allocation2 + $0x10] sm:$0xff] %v5713_v29  ;;  %v2467_v31 = vmul.f32 %v5677_v47, %v2444_v28 }
 0x6be   : > { %v2466_v32 = vmul.f32 %v5677_v47, %v2443_v11 }
 0x6bf   : > { %v2490_v9 = vadd.f32 %v5686_v52, %v2467_v31 }
 0x6c0   : > { %v3691_v46 = vpop.f32.mrb[22].mxu0  ;;  %v2489_v55 = vadd.f32 %v5686_v52, %v2466_v32 }
 0x6c1   : > { %v2424_v41 = vsub.f32 %v3691_v46, %v5667_v44  ;;  %v2358_v33 = vpop.f32.mrb[23].mxu0  ;;  %vm2506_vm4 = vcmp.gt.f32.partialorder %v2490_v9, 0.0  ;;  %v2522_v50 = vmul.f32 0.01, %v2490_v9 }
 0x6c2   : > { %v2423_v21 = vsub.f32 %v2358_v33, %v5667_v44  ;;  %vm2505_vm5 = vcmp.gt.f32.partialorder %v2489_v55, 0.0  ;;  %v2521_v36 = vmul.f32 0.01, %v2489_v55 }
 0x6c3   : > { %v2446_v19 = vmul.f32 %v5669_v8, %v2424_v41  ;;  %v5724_v38 = vsel %vm2506_vm4, %v2490_v9, %v2522_v50 }
 0x6c4   : > { %v2445_v56 = vmul.f32 %v5669_v8, %v2423_v21  ;;  %2554 = vst [vmem:[#allocation2 + $0x28] sm:$0xff] %v5724_v38  ;;  %v5728_v39 = vsel %vm2505_vm5, %v2489_v55, %v2521_v36 }
 0x6c5   : > { %v2469_v34 = vmul.f32 %v5677_v47, %v2446_v19  ;;  %2553 = vst [vmem:[#allocation2 + $0x20] sm:$0xff] %v5728_v39 }
 0x6c6   : > { %v2468_v5 = vmul.f32 %v5677_v47, %v2445_v56 }
 0x6c7   : > { %v2492_v51 = vadd.f32 %v5686_v52, %v2469_v34 }
 0x6c8   : > { %v2491_v61 = vadd.f32 %v5686_v52, %v2468_v5  ;;  %v3694_v59 = vpop.f32.mrb[32].mxu1 }
 0x6c9   : > { %vm2508_vm6 = vcmp.gt.f32.partialorder %v2492_v51, 0.0  ;;  %v2524_v40 = vmul.f32 0.01, %v2492_v51  ;;  %v2426_v15 = vsub.f32 %v3694_v59, %v5667_v44  ;;  %v2368_v62 = vpop.f32.mrb[33].mxu1 }
 0x6ca   : > { %vm2507_vm7 = vcmp.gt.f32.partialorder %v2491_v61, 0.0  ;;  %v2523_v0 = vmul.f32 0.01, %v2491_v61  ;;  %v2425_v30 = vsub.f32 %v2368_v62, %v5667_v44 }
 0x6cb   : > { %v5737_v42 = vsel %vm2508_vm6, %v2492_v51, %v2524_v40  ;;  %v2448_v12 = vmul.f32 %v5669_v8, %v2426_v15 }
 0x6cc   : > { %2556 = vst [vmem:[#allocation2 + $0x38] sm:$0xff] %v5737_v42  ;;  %v5741_v53 = vsel %vm2507_vm7, %v2491_v61, %v2523_v0  ;;  %v2447_v43 = vmul.f32 %v5669_v8, %v2425_v30  ;;  %v2647_v0 = vld [vmem:[#allocation8] sm:$0xff] (!%p3112_p13)  ;;  %v2648_v30 = vld [vmem:[#allocation8 + $0x8] sm:$0xff] (!%p3112_p13) }
 0x6cd   : > { %2555 = vst [vmem:[#allocation2 + $0x30] sm:$0xff] %v5741_v53  ;;  %v2471_v37 = vmul.f32 %v5677_v47, %v2448_v12  ;;  %v4602_v12 = vmov (!%p3112_p13), 0.0|0.0  }
 0x6ce   : > { %v2470_v57 = vmul.f32 %v5677_v47, %v2447_v43  ;;  %4001 = vmatprep.subr.bf16.mxu0 (!%p3112_p13), %v4602_v12  ;;  %v4005_v43 = vpack.c.bf16 (!%p3112_p13), %v5709_v26, %v5713_v29  ;;  %4025 = vmatprep.subr.bf16.mxu1 (!%p3112_p13), %v4602_v12  ;;  %v2651_v26 = vld [vmem:[#allocation8 + $0x20] sm:$0xff] (!%p3112_p13)  ;;  %v2652_v29 = vld [vmem:[#allocation8 + $0x28] sm:$0xff] (!%p3112_p13) }
 0x6cf   : > { %v2494_v6 = vadd.f32 %v5686_v52, %v2471_v37  ;;  %v2649_v37 = vld [vmem:[#allocation8 + $0x10] sm:$0xff] (!%p3112_p13) }
 0x6d0   : > { %v2493_v35 = vadd.f32 %v5686_v52, %v2470_v57  ;;  %v3697_v10 = vpop.f32.mrb[34].mxu1  ;;  %v2650_v57 = vld [vmem:[#allocation8 + $0x18] sm:$0xff] (!%p3112_p13) }
 0x6d1   : > { %vm2510_vm8 = vcmp.gt.f32.partialorder %v2494_v6, 0.0  ;;  %v2526_v63 = vmul.f32 0.01, %v2494_v6  ;;  %v2428_v3 = vsub.f32 %v3697_v10, %v5667_v44  ;;  %v2378_v1 = vpop.f32.mrb[35].mxu1  ;;  %v4032_v10 = vpack.c.bf16 (!%p3112_p13), %v2652_v29, %v2651_v26 }
 0x6d2   : > { %vm2509_vm9 = vcmp.gt.f32.partialorder %v2493_v35, 0.0  ;;  %v2525_v17 = vmul.f32 0.01, %v2493_v35  ;;  %v2427_v4 = vsub.f32 %v2378_v1, %v5667_v44  ;;  %v2654_v1 = vld [vmem:[#allocation8 + $0x38] sm:$0xff] (!%p3112_p13) }
 0x6d3   : > { %v5751_v14 = vsel %vm2510_vm8, %v2494_v6, %v2526_v63  ;;  %v2450_v48 = vmul.f32 %v5669_v8, %v2428_v3  ;;  %v4604_v6 = vmov (!%p3112_p13), 0.0   ;;  %v4011_v63 = vpack.c.bf16 (!%p3112_p13), %v5737_v42, %v5741_v53  ;;  %v2653_v3 = vld [vmem:[#allocation8 + $0x30] sm:$0xff] (!%p3112_p13) }
 0x6d4   : > { %2558 = vst [vmem:[#allocation2 + $0x48] sm:$0xff] %v5751_v14  ;;  %v5755_v23 = vsel %vm2509_vm9, %v2493_v35, %v2525_v17  ;;  %v2449_v54 = vmul.f32 %v5669_v8, %v2427_v4  ;;  %3736 = vmatprep.mubr.msk.f32.mxu0 (!%p3112_p13), %vm4603_vm0, %v4604_v6  ;;  %3771 = vmatprep.mubr.msk.f32.mxu1 (!%p3112_p13), %vm4603_vm0, %v4604_v6  ;;  %v2655_v17 = vld [vmem:[#allocation8 + $0x40] sm:$0xff] (!%p3112_p13)  ;;  %v2656_v4 = vld [vmem:[#allocation8 + $0x48] sm:$0xff] (!%p3112_p13) }
 0x6d5   : > { %2557 = vst [vmem:[#allocation2 + $0x40] sm:$0xff] %v5755_v23  ;;  %v2473_v22 = vmul.f32 %v5677_v47, %v2450_v48  ;;  %v4008_v35 = vpack.c.bf16 (!%p3112_p13), %v5724_v38, %v5728_v39  ;;  %v4035_v38 = vpack.c.bf16 (!%p3112_p13), %v2654_v1, %v2653_v3  ;;  %v4014_v39 = vpack.c.bf16 (!%p3112_p13), %v5751_v14, %v5755_v23  ;;  %v2657_v48 = vld [vmem:[#allocation8 + $0x50] sm:$0xff] (!%p3112_p13) }
 0x6d6   : > { %v2472_v49 = vmul.f32 %v5677_v47, %v2449_v54  ;;  %v4038_v42 = vpack.c.bf16 (!%p3112_p13), %v2656_v4, %v2655_v17  ;;  %v2658_v54 = vld [vmem:[#allocation8 + $0x58] sm:$0xff] (!%p3112_p13) }
 0x6d7   : > { %v2496_v16 = vadd.f32 %v5686_v52, %v2473_v22  ;;  %v4041_v14 = vpack.c.bf16 (!%p3112_p13), %v2658_v54, %v2657_v48  ;;  %v2659_v22 = vld [vmem:[#allocation8 + $0x60] sm:$0xff] (!%p3112_p13) }
 0x6d8   : > { %v2495_v60 = vadd.f32 %v5686_v52, %v2472_v49  ;;  %v3700_v20 = vpop.f32.mrb[36].mxu1  ;;  %v2660_v49 = vld [vmem:[#allocation8 + $0x68] sm:$0xff] (!%p3112_p13) }
 0x6d9   : > { %vm2512_vm10 = vcmp.gt.f32.partialorder %v2496_v16, 0.0  ;;  %v2528_v58 = vmul.f32 0.01, %v2496_v16  ;;  %v2430_v25 = vsub.f32 %v3700_v20, %v5667_v44  ;;  %v2388_v13 = vpop.f32.mrb[37].mxu1  ;;  %v2661_v20 = vld [vmem:[#allocation8 + $0x70] sm:$0xff] (!%p3112_p13) }
 0x6da   : > { %vm2511_vm11 = vcmp.gt.f32.partialorder %v2495_v60, 0.0  ;;  %v2527_v27 = vmul.f32 0.01, %v2495_v60  ;;  %v2429_v2 = vsub.f32 %v2388_v13, %v5667_v44 }
 0x6db   : > { %v5765_v7 = vsel %vm2512_vm10, %v2496_v16, %v2528_v58  ;;  %v2452_v28 = vmul.f32 %v5669_v8, %v2430_v25  ;;  %v4044_v16 = vpack.c.bf16 (!%p3112_p13), %v2660_v49, %v2659_v22  ;;  %v2662_v58 = vld [vmem:[#allocation8 + $0x78] sm:$0xff] (!%p3112_p13)  ;;  %v3113_v25 = vld [vmem:[%s5989_s20] ss:$0 sm:$0xff] (!%p3112_p13) }
 0x6dc   : > { %2560 = vst [vmem:[#allocation2 + $0x58] sm:$0xff] %v5765_v7  ;;  %v5769_v11 = vsel %vm2511_vm11, %v2495_v60, %v2527_v27  ;;  %v2451_v31 = vmul.f32 %v5669_v8, %v2429_v2  ;;  %v3703_v32 = vpop.f32.mrb[38].mxu1  ;;  %v4047_v13 = vpack.c.bf16 (!%p3112_p13), %v2662_v58, %v2661_v20  ;;  %vm2574_vm1 = vcmp.eq.s32.totalorder (!%p3112_p13), %v3113_v25, %v5214_v45  ;;  %v2743_v2 = vld [vmem:[#allocation9] sm:$0xff] (!%p3112_p13)  ;;  %v2748_v45 = vld [vmem:[#allocation9 + $0x28] sm:$0xff] (!%p3112_p13) }
 0x6dd   : > { %2559 = vst [vmem:[#allocation2 + $0x50] sm:$0xff] %v5769_v11  ;;  %v2475_v9 = vmul.f32 %v5677_v47, %v2452_v28  ;;  %v2432_v46 = vsub.f32 %v3703_v32, %v5667_v44  ;;  %v2398_v55 = vpop.f32.mrb[39].mxu1  ;;  %v4017_v53 = vpack.c.bf16 (!%p3112_p13), %v5765_v7, %v5769_v11  ;;  %v4605_v27 = vmov (!%p3112_p13), 1.0   ;;  %v2744_v7 = vld [vmem:[#allocation9 + $0x8] sm:$0xff] (!%p3112_p13)  ;;  %v2745_v28 = vld [vmem:[#allocation9 + $0x10] sm:$0xff] (!%p3112_p13) }
 0x6de   : > { %v2474_v41 = vmul.f32 %v5677_v47, %v2451_v31  ;;  %v2431_v33 = vsub.f32 %v2398_v55, %v5667_v44  ;;  %v4050_v11 = vpack.c.bf16 (!%p3112_p13), %v2744_v7, %v2743_v2  ;;  %v2746_v31 = vld [vmem:[#allocation9 + $0x18] sm:$0xff] (!%p3112_p13)  ;;  %v2749_v55 = vld [vmem:[#allocation9 + $0x30] sm:$0xff] (!%p3112_p13) }
 0x6df   : > { %v2498_v50 = vadd.f32 %v5686_v52, %v2475_v9  ;;  %v2454_v21 = vmul.f32 %v5669_v8, %v2432_v46  ;;  %v4053_v32 = vpack.c.bf16 (!%p3112_p13), %v2746_v31, %v2745_v28  ;;  %v2747_v9 = vld [vmem:[#allocation9 + $0x20] sm:$0xff] (!%p3112_p13) }
 0x6e0   : > { %v2497_v36 = vadd.f32 %v5686_v52, %v2474_v41  ;;  %v2453_v19 = vmul.f32 %v5669_v8, %v2431_v33  ;;  %v4056_v46 = vpack.c.bf16 (!%p3112_p13), %v2748_v45, %v2747_v9  ;;  %v2750_v41 = vld [vmem:[#allocation9 + $0x38] sm:$0xff] (!%p3112_p13) }
 0x6e1   : > { %vm2514_vm12 = vcmp.gt.f32.partialorder %v2498_v50, 0.0  ;;  %v2530_v56 = vmul.f32 0.01, %v2498_v50  ;;  %v2477_v34 = vmul.f32 %v5677_v47, %v2454_v21  ;;  %v4059_v33 = vpack.c.bf16 (!%p3112_p13), %v2750_v41, %v2749_v55  ;;  %v2752_v21 = vld [vmem:[#allocation9 + $0x48] sm:$0xff] (!%p3112_p13) }
 0x6e2   : > { %vm2513_vm13 = vcmp.gt.f32.partialorder %v2497_v36, 0.0  ;;  %v2529_v5 = vmul.f32 0.01, %v2497_v36  ;;  %v2476_v51 = vmul.f32 %v5677_v47, %v2453_v19  ;;  %v2753_v19 = vld [vmem:[#allocation9 + $0x50] sm:$0xff] (!%p3112_p13) }
 0x6e3   : > { %v5783_v61 = vsel %vm2514_vm12, %v2498_v50, %v2530_v56  ;;  %v2500_v44 = vadd.f32 %v5686_v52, %v2477_v34  ;;  %2568 = sbr.rel (%p3112_p13) target bundleno = 2441 (0x989), region = 136  ;;  %v2751_v50 = vld [vmem:[#allocation9 + $0x40] sm:$0xff] (!%p3112_p13)  ;;  %v2754_v56 = vld [vmem:[#allocation9 + $0x58] sm:$0xff] (!%p3112_p13) }
 0x6e4   : > { %2562 = vst [vmem:[#allocation2 + $0x68] sm:$0xff] %v5783_v61  ;;  %v5787_v59 = vsel %vm2513_vm13, %v2497_v36, %v2529_v5  ;;  %v2499_v40 = vadd.f32 %v5686_v52, %v2476_v51  ;;  %v4002_v52 = vpack.c.bf16 (!%p3112_p13), %v5695_v18, %v5699_v24  ;;  %v4026_v18 = vpack.c.bf16 (!%p3112_p13), %v2648_v30, %v2647_v0  ;;  %v2755_v5 = vld [vmem:[#allocation9 + $0x60] sm:$0xff] (!%p3112_p13)  ;;  %v2756_v51 = vld [vmem:[#allocation9 + $0x68] sm:$0xff] (!%p3112_p13) }
 0x6e5   : > { %2561 = vst [vmem:[#allocation2 + $0x60] sm:$0xff] %v5787_v59  ;;  %vm2516_vm14 = vcmp.gt.f32.partialorder %v2500_v44, 0.0  ;;  %v2532_v8 = vmul.f32 0.01, %v2500_v44  ;;  %v4029_v24 = vpack.c.bf16 (!%p3112_p13), %v2650_v57, %v2649_v37  ;;  %v4020_v23 = vpack.c.bf16 (!%p3112_p13), %v5783_v61, %v5787_v59 }
 0x6e6   : > { %vm2515_vm15 = vcmp.gt.f32.partialorder %v2499_v40, 0.0  ;;  %v2531_v15 = vmul.f32 0.01, %v2499_v40  ;;  %4003 = vmatpush3.bf16.msra.mxu0 (!%p3112_p13), %v4002_v52  ;;  %4027 = vmatpush3.bf16.msra.mxu1 (!%p3112_p13), %v4026_v18  ;;  %v4062_v36 = vpack.c.bf16 (!%p3112_p13), %v2752_v21, %v2751_v50  ;;  %v4065_v34 = vpack.c.bf16 (!%p3112_p13), %v2754_v56, %v2753_v19 }
 0x6e7   : > { %v5791_v62 = vsel %vm2516_vm14, %v2500_v44, %v2532_v8  ;;  %4004 = vmatprep.subr.bf16.mxu0 (!%p3112_p13), %v4602_v12  ;;  %4028 = vmatprep.subr.bf16.mxu1 (!%p3112_p13), %v4602_v12  ;;  %v4068_v61 = vpack.c.bf16 (!%p3112_p13), %v2756_v51, %v2755_v5  ;;  %v2758_v8 = vld [vmem:[#allocation9 + $0x78] sm:$0xff] (!%p3112_p13) }
 0x6e8   : > { %2564 = vst [vmem:[#allocation2 + $0x78] sm:$0xff] %v5791_v62  ;;  %v5794_v47 = vsel %vm2515_vm15, %v2499_v40, %v2531_v15  ;;  %v2757_v40 = vld [vmem:[#allocation9 + $0x70] sm:$0xff] (!%p3112_p13) }
 0x6e9   : > { %2563 = vst [vmem:[#allocation2 + $0x70] sm:$0xff] %v5794_v47  ;;  %v4023_v60 = vpack.c.bf16 (!%p3112_p13), %v5791_v62, %v5794_v47  ;;  %v4071_v15 = vpack.c.bf16 (!%p3112_p13), %v2758_v8, %v2757_v40  ;;  %v3116_v62 = vld [vmem:[%s5990_s24] ss:$0 sm:$0xff] (!%p3112_p13) }
 0x6ea   : > { %4006 = vmatpush3.bf16.msra.mxu0 %v4005_v43  ;;  %4030 = vmatpush3.bf16.msra.mxu1 %v4029_v24 }
 0x6eb   : > { %4007 = vmatprep.subr.bf16.mxu0 %v4602_v12  ;;  %4031 = vmatprep.subr.bf16.mxu1 %v4602_v12 }
 0x6ee   : > { %4009 = vmatpush3.bf16.msra.mxu0 %v4008_v35  ;;  %4033 = vmatpush3.bf16.msra.mxu1 %v4032_v10 }
 0x6ef   : > { %4010 = vmatprep.subr.bf16.mxu0 %v4602_v12  ;;  %4034 = vmatprep.subr.bf16.mxu1 %v4602_v12 }
 0x6f2   : > { %4012 = vmatpush3.bf16.msra.mxu0 %v4011_v63  ;;  %4036 = vmatpush3.bf16.msra.mxu1 %v4035_v38 }
 0x6f3   : > { %4013 = vmatprep.subr.bf16.mxu0 %v4602_v12  ;;  %4037 = vmatprep.subr.bf16.mxu1 %v4602_v12 }
 0x6f6   : > { %4015 = vmatpush3.bf16.msra.mxu0 %v4014_v39  ;;  %4039 = vmatpush3.bf16.msra.mxu1 %v4038_v42 }
 0x6f7   : > { %4016 = vmatprep.subr.bf16.mxu0 %v4602_v12  ;;  %4040 = vmatprep.subr.bf16.mxu1 %v4602_v12 }
 0x6fa   : > { %4018 = vmatpush3.bf16.msra.mxu0 %v4017_v53  ;;  %4042 = vmatpush3.bf16.msra.mxu1 %v4041_v14 }
 0x6fb   : > { %4019 = vmatprep.subr.bf16.mxu0 %v4602_v12  ;;  %4043 = vmatprep.subr.bf16.mxu1 %v4602_v12 }
 0x6fe   : > { %4021 = vmatpush3.bf16.msra.mxu0 %v4020_v23  ;;  %4045 = vmatpush3.bf16.msra.mxu1 %v4044_v16 }
 0x6ff   : > { %4022 = vmatprep.subr.bf16.mxu0 %v4602_v12  ;;  %4046 = vmatprep.subr.bf16.mxu1 %v4602_v12 }
 0x702   : > { %4024 = vmatpush3.bf16.msra.mxu0 %v4023_v60  ;;  %4048 = vmatpush3.bf16.msra.mxu1 %v4047_v13 }
 0x703   : > { %4049 = vmatprep.subr.bf16.mxu0 %v4602_v12 }
 0x705   : > { %3737 = vmatmul.mubr.msk.f32.vlgmr.msra.gmra.mrb[0].mxu0 %vm2574_vm1, %v4605_v27 }
 0x706   : > { %3806 = vmatprep.mubr.msk.f32.mxu0 %vm4603_vm0, %v4604_v6  ;;  %4051 = vmatpush3.bf16.msra.mxu0 %v4050_v11 }
 0x707   : > { %4052 = vmatprep.subr.bf16.mxu0 %v4602_v12 }
 0x70a   : > { %4054 = vmatpush3.bf16.msra.mxu0 %v4053_v32 }
 0x70b   : > { %4055 = vmatprep.subr.bf16.mxu0 %v4602_v12 }
 0x70e   : > { %4057 = vmatpush3.bf16.msra.mxu0 %v4056_v46 }
 0x70f   : > { %4058 = vmatprep.subr.bf16.mxu0 %v4602_v12 }
 0x712   : > { %4060 = vmatpush3.bf16.msra.mxu0 %v4059_v33 }
 0x713   : > { %4061 = vmatprep.subr.bf16.mxu0 %v4602_v12 }
 0x716   : > { %4063 = vmatpush3.bf16.msra.mxu0 %v4062_v36 }
 0x717   : > { %4064 = vmatprep.subr.bf16.mxu0 %v4602_v12 }
 0x71a   : > { %4066 = vmatpush3.bf16.msra.mxu0 %v4065_v34 }
 0x71b   : > { %4067 = vmatprep.subr.bf16.mxu0 %v4602_v12 }
 0x71e   : > { %4069 = vmatpush3.bf16.msra.mxu0 %v4068_v61 }
 0x71f   : > { %4070 = vmatprep.subr.bf16.mxu0 %v4602_v12  ;;  %v3117_v12 = vld [vmem:[%s5991_s25] ss:$0 sm:$0xff] }
 0x722   : > { %4072 = vmatpush3.bf16.msra.mxu0 %v4071_v15 }
 0x7d8   : > { %v2643_v44 = vpop.f32.mrb[0].mxu0 }
 0x7d9   : > { %v3738_v59 = vpop.f32.mrb[1].mxu0  ;;  %3772 = vmatmul.mubr.f32.vlgmr.msra.gmra.mrb[0].mxu1 %v2643_v44 }
 0x8ac   : > { %v2736_v47 = vpop.f32.mrb[0].mxu1 }
 0x8ad   : > { %v2737_v52 = vadd.f32 %v3116_v62, %v2736_v47  ;;  %v3773_v0 = vpop.f32.mrb[1].mxu1 }
 0x8af   : > { %vm2740_vm2 = vcmp.gt.f32.partialorder %v2737_v52, 0.0  ;;  %v2741_v30 = vmul.f32 0.01, %v2737_v52 }
 0x8b1   : > { %v2742_v43 = vsel %vm2740_vm2, %v2737_v52, %v2741_v30 }
 0x8b2   : > { %3807 = vmatmul.mubr.f32.vlgmr.msra.gmra.mrb[2].mxu0 %v2742_v43 }
 0x985   : > { %v2832_v37 = vpop.f32.mrb[2].mxu0 }
 0x986   : > { %v2833_v57 = vadd.f32 %v3117_v12, %v2832_v37  ;;  %v3808_v6 = vpop.f32.mrb[3].mxu0 }
 0x988   : > { %2836 = vst [vmem:[#allocation14] sm:$0xff] %v2833_v57 }
 0x989 PF: > { %p4181_p6 = scmp.eq.s32.totalorder %s4731_s2, 2  ;;  %s4606_s9 = smov [#allocation14]  }
 0x98a   : > { %s2844_s5 = sshll.u32 %s4606_s9, 4  ;;  %s2845_s5 = int_to_ptr.vmem [resolvable:$true] %s2844_s5 }
 0x98b   : > { %s4513_s3 = scalar_lea.vmem %s2845_s5, 128  ;;  %p4520_p9 = scmp.lt.s32.totalorder %s2845_s5, %s2845_s5 }
 0x98c   : > { %p4514_p8 = scmp.ne.s32.totalorder %s2845_s5, %s4513_s3  ;;  %p4521_p12 = scmp.lt.s32.totalorder %s4513_s3, %s4513_s3 }
 0x98e   : > { %p4515_p1 = pnand %p4514_p8, %p4181_p6  ;;  %p4522_p0 = por %p4521_p12, %p4520_p9 }
 0x990   : > { %p4516_p10 = pneg %p4515_p1 }
 0x992   : > { %p4523_p3 = pnand %p4522_p0, %p4516_p10 }
 0x994   : > { %4526 = shalt.err (!%p4523_p3)
}
 0x995   : > { %s5992_s12 = sld [smem:[#allocation38_spill]] }
 0x99b   : > { %s4527_s11 = scalar_lea.hbm %s5992_s12, 128 }
 0x99c   : > { %p4528_p7 = scmp.ne.s32.totalorder %s5992_s12, %s4527_s11  ;;  %p4533_p4 = scmp.lt.u32.totalorder %s4527_s11, %s5992_s12 }
 0x99e   : > { %p4529_p11 = pnand %p4528_p7, %p4181_p6 }
 0x9a0   : > { %p4530_p2 = pneg %p4529_p11 }
 0x9a2   : > { %p4535_p5 = pnand %p4533_p4, %p4530_p2 }
 0x9a4   : > { %4538 = shalt.err (!%p4535_p5)
}
 0x9a5   : > { %4146 = dma.vmem_to_hbm [thread:$0]  (%p4181_p6), %s2845_s5, 128, %s5992_s12, [#allocation5]  }
 0x9a6   : > { %4572 = dma.done.wait (%p4181_p6), [#allocation5], 128  }
 0x9a7   : > { %4574 = vsyncadd (%p4181_p6), [#allocation5], 4294967168 }
 0x9a8 PF: > { %s5993_s24 = sld [smem:[#allocation21_spill]]  ;;  %s5994_s17 = sld [smem:[#allocation20_spill]] }
 0x9a9   : > { %s5995_s23 = sld [smem:[#allocation22_spill]]  ;;  %s5996_s1 = smov %s4581_s22 }
 0x9ae   : > { %p31_p13 = scmp.ge.s32.totalorder %s5993_s24, 5   ;;  %s5997_s22 = smov %s5994_s17 }
 0x9b0   :  { %33 = sbr.rel (!%p31_p13) target bundleno = 22 (0x16), region = 197 }
 0x9b7   :  { %2857 = vsyncpa [#allocation4], 1 }
 0x9b8   :  { %2859 = vsyncpa [#allocation4 + $0x1], 1 }
 0x9b9   :  { %2860 = vsyncpa [#allocation7], 1 }
 0x9ba   :  { %2861 = vsyncpa [#allocation10], 1 }
 0x9bb   :  { %2862 = vsyncpa [#allocation5], 1 }
 0x9bc   :  { %2864 = vsyncpa [#allocation5 + $0x1], 1 }

</bundles_post_ra>
